<compile_context>
chip_gen: v6e
topology: v6e:2x2x1
jax: 0.10.0
libtpu: 0.0.40
codegen_flags: <defaults>
</compile_context>

<pallas_src>
import numpy as np

import jax
import jax.numpy as jnp
from jax import lax
from jax.experimental import pallas as pl
from jax.experimental.pallas import tpu as pltpu

EPS = 1e-5


def make_block_kernel(stride, has_proj, N, Cin, Cmid, Cout, H, W, PAD):
    HW = H * W
    Ho = (H - 1) // stride + 1
    Wo = (W - 1) // stride + 1
    HWo = Ho * Wo
    M1 = N * HW        # elements per channel for BN1 stats
    M2 = N * HWo       # elements per channel for BN2 / BN3 / BNsc stats
    f32 = jnp.float32

    def kernel(*refs):
        it = iter(refs)
        x_ref = next(it)                   # (N, Cin, HW)   NCHW, spatial flattened
        cm_ref = next(it)                  # (2, HW)        column-wrap masks (f32)
        sel_ref = next(it) if stride > 1 else None   # (HW, HWo) one-hot subsampler
        w1_ref, g1_ref, b1_ref = next(it), next(it), next(it)
        w2_ref, g2_ref, b2_ref = next(it), next(it), next(it)
        w3_ref, g3_ref, b3_ref = next(it), next(it), next(it)
        if has_proj:
            wsc_ref, gsc_ref, bsc_ref = next(it), next(it), next(it)
        out_ref = next(it)                 # (N, Cout, HWo)
        h1p_ref = next(it)                 # (N, Cmid, HW + 2*PAD) VMEM scratch

        # ---------------- Stage 1: 1x1 expand conv + fused BN1 stats ----------------
        w1 = w1_ref[...]                                   # (Cmid, Cin)
        xs = [x_ref[n] for n in range(N)]                  # each (Cin, HW), lane-dense
        h1_raw = []
        s1 = jnp.zeros((Cmid, 1), f32)
        q1 = jnp.zeros((Cmid, 1), f32)
        for n in range(N):
            h = jnp.dot(w1, xs[n], preferred_element_type=f32)   # (Cmid, HW)
            h1_raw.append(h)
            s1 = s1 + jnp.sum(h, axis=1, keepdims=True)          # XLU lane reduce
            q1 = q1 + jnp.sum(h * h, axis=1, keepdims=True)
        mean1 = s1 / M1
        var1 = jnp.maximum(q1 / M1 - mean1 * mean1, 0.0)
        sc1 = g1_ref[...] * lax.rsqrt(var1 + EPS)                # (Cmid, 1)
        sh1 = b1_ref[...] - mean1 * sc1

        # write BN1+ReLU result into the zero-padded flat scratch (aligned stores)
        zpad = jnp.zeros((N, Cmid, PAD), f32)
        h1p_ref[:, :, 0:PAD] = zpad
        h1p_ref[:, :, PAD + HW:PAD + HW + PAD] = zpad
        for n in range(N):
            h1p_ref[n, :, PAD:PAD + HW] = jnp.maximum(h1_raw[n] * sc1 + sh1, 0.0)

        # --------- Stage 2: 3x3 depthwise = 9 shifted reads, register accumulate ----
        w2 = w2_ref[...]                                   # (Cmid, 9), read once
        cm = cm_ref[...]                                   # (2, HW)
        mask_m = cm[0:1, :].reshape(1, 1, HW)              # valid when source col wrap (dw=-1)
        mask_p = cm[1:2, :].reshape(1, 1, HW)              # valid when source col wrap (dw=+1)

        taps = [(1, 1)] + [(kh, kw) for kh in range(3) for kw in range(3)
                           if (kh, kw) != (1, 1)]          # center tap first -> init acc
        acc = None
        for kh, kw in taps:
            dh, dw = kh - 1, kw - 1
            k = kh * 3 + kw
            start = PAD + dh * W + dw
            tap = h1p_ref[:, :, start:start + HW]          # (N, Cmid, HW)
            if dw == -1:
                tap = tap * mask_m
            elif dw == 1:
                tap = tap * mask_p
            term = tap * w2[:, k:k + 1].reshape(1, Cmid, 1)
            acc = term if acc is None else acc + term      # stays in registers

        # --------- Stage 3: stride subsample (one-hot matmul) + fused BN2 stats -----
        if stride > 1:
            sel = sel_ref[...]                             # (HW, HWo)
        h2_raw = []
        s2 = jnp.zeros((Cmid, 1), f32)
        q2 = jnp.zeros((Cmid, 1), f32)
        for n in range(N):
            h = acc[n]                                     # (Cmid, HW)
            if stride > 1:
                h = jnp.dot(h, sel, preferred_element_type=f32)   # (Cmid, HWo)
            h2_raw.append(h)
            s2 = s2 + jnp.sum(h, axis=1, keepdims=True)
            q2 = q2 + jnp.sum(h * h, axis=1, keepdims=True)
        mean2 = s2 / M2
        var2 = jnp.maximum(q2 / M2 - mean2 * mean2, 0.0)
        sc2 = g2_ref[...] * lax.rsqrt(var2 + EPS)
        sh2 = b2_ref[...] - mean2 * sc2

        # --------- Stage 4: 1x1 project (+ optional shortcut conv) + fused stats ----
        w3 = w3_ref[...]                                   # (Cout, Cmid)
        h3_raw, scut_raw = [], []
        s3 = jnp.zeros((Cout, 1), f32)
        q3 = jnp.zeros((Cout, 1), f32)
        if has_proj:
            wsc = wsc_ref[...]
            ss = jnp.zeros((Cout, 1), f32)
            qs = jnp.zeros((Cout, 1), f32)
        for n in range(N):
            h2n = jnp.maximum(h2_raw[n] * sc2 + sh2, 0.0)
            h = jnp.dot(w3, h2n, preferred_element_type=f32)       # (Cout, HWo)
            h3_raw.append(h)
            s3 = s3 + jnp.sum(h, axis=1, keepdims=True)
            q3 = q3 + jnp.sum(h * h, axis=1, keepdims=True)
            if has_proj:                                            # stride==1 here
                s = jnp.dot(wsc, xs[n], preferred_element_type=f32)  # (Cout, HW)
                scut_raw.append(s)
                ss = ss + jnp.sum(s, axis=1, keepdims=True)
                qs = qs + jnp.sum(s * s, axis=1, keepdims=True)
        mean3 = s3 / M2
        var3 = jnp.maximum(q3 / M2 - mean3 * mean3, 0.0)
        sc3 = g3_ref[...] * lax.rsqrt(var3 + EPS)
        sh3 = b3_ref[...] - mean3 * sc3
        if has_proj:
            means = ss / M2
            varss = jnp.maximum(qs / M2 - means * means, 0.0)
            scs = gsc_ref[...] * lax.rsqrt(varss + EPS)
            shs = bsc_ref[...] - means * scs

        # --------- Stage 5: BN3 (+ shortcut) and one lane-dense store per image -----
        for n in range(N):
            y = h3_raw[n] * sc3 + sh3
            if stride == 1:
                if has_proj:
                    y = y + (scut_raw[n] * scs + shs)
                else:
                    y = y + xs[n]          # identity shortcut (Cin == Cout)
            out_ref[n] = y

    return kernel


def block_forward(x_nchw, params, stride):
    """Block forward pass. Input/output are NCHW (PyTorch convention)."""
    N, Cin, H, W = x_nchw.shape
    Cmid = params["w1"].shape[0]
    Cout = params["w3"].shape[0]
    Ho = (H - 1) // stride + 1
    Wo = (W - 1) // stride + 1
    HW, HWo = H * W, Ho * Wo
    has_proj = (stride == 1 and Cin != Cout)
    PAD = ((W + 1 + 127) // 128) * 128      # lane-aligned padding >= W+1

    # NCHW is already channels-in-sublane / spatial-in-lane: free reshape only,
    # no HBM-round-trip transposes.
    x = x_nchw.reshape(N, Cin, HW)

    # Static column-wrap masks for the flat-shifted depthwise taps
    # (row 0: valid for dw=-1 taps, row 1: valid for dw=+1 taps).
    col = np.arange(HW) % W
    colmask = jnp.asarray(
        np.stack([(col > 0), (col < W - 1)]).astype(np.float32))      # (2, HW)

    args = [x, colmask]
    if stride > 1:
        # Static one-hot subsampler: flat (H*W) -> flat (Ho*Wo), picks (s*oh, s*ow).
        p = np.arange(HW)
        q = np.arange(HWo)
        selm = ((p[:, None] // W == stride * (q[None, :] // Wo)) &
                (p[:, None] % W == stride * (q[None, :] % Wo))).astype(np.float32)
        args.append(jnp.asarray(selm))
    args += [params["w1"], params["g1"], params["b1"],
             params["w2"], params["g2"], params["b2"],
             params["w3"], params["g3"], params["b3"]]
    if has_proj:
        args += [params["wsc"], params["gsc"], params["bsc"]]

    kernel = make_block_kernel(stride, has_proj, N, Cin, Cmid, Cout, H, W, PAD)

    in_specs = [pl.BlockSpec(a.shape, (lambda i, nd=a.ndim: (0,) * nd)) for a in args]

    # TODO(synk): at production MobileNet widths, tile over H (halo of 1 row) and N
    # with dimension_semantics=("parallel",...) for v7x's 2 TensorCores / 64 MiB VMEM;
    # that requires a two-pass BN (stats pass + normalize pass) since training-mode
    # batch statistics span all tiles.  At these shapes one grid step is exact & tiny.
    out = pl.pallas_call(
        kernel,
        grid=(1,),
        in_specs=in_specs,
        out_specs=pl.BlockSpec((N, Cout, HWo), lambda i: (0, 0, 0)),
        out_shape=jax.ShapeDtypeStruct((N, Cout, HWo), jnp.float32),
        scratch_shapes=[pltpu.VMEM((N, Cmid, HW + 2 * PAD), jnp.float32)],
        compiler_params=pltpu.CompilerParams(
            dimension_semantics=("arbitrary",),
            vmem_limit_bytes=32 * 1024 * 1024,
        ),
    )(*args)

    return out.reshape(N, Cout, Ho, Wo)      # free reshape, output stays NCHW


# ------------------------ pure-JAX reference (NCHW) ------------------------ #
def block_ref_nchw(x, params, stride):
    def bn(v, g, b):
        mean = jnp.mean(v, axis=(0, 2, 3), keepdims=True)
        var = jnp.mean((v - mean) ** 2, axis=(0, 2, 3), keepdims=True)
        return ((v - mean) / jnp.sqrt(var + EPS) * g.reshape(1, -1, 1, 1)
                + b.reshape(1, -1, 1, 1))

    dn = ("NCHW", "OIHW", "NCHW")
    hi = lax.Precision.HIGHEST
    Cin = x.shape[1]
    Cmid = params["w1"].shape[0]
    Cout = params["w3"].shape[0]

    w1 = params["w1"].reshape(Cmid, Cin, 1, 1)
    h = lax.conv_general_dilated(x, w1, (1, 1), "VALID", dimension_numbers=dn,
                                 precision=hi)
    h = jax.nn.relu(bn(h, params["g1"], params["b1"]))

    w2 = params["w2"].reshape(Cmid, 1, 3, 3)       # k = kh*3 + kw
    h = lax.conv_general_dilated(h, w2, (stride, stride), ((1, 1), (1, 1)),
                                 dimension_numbers=dn, feature_group_count=Cmid,
                                 precision=hi)
    h = jax.nn.relu(bn(h, params["g2"], params["b2"]))

    w3 = params["w3"].reshape(Cout, Cmid, 1, 1)
    h = lax.conv_general_dilated(h, w3, (1, 1), "VALID", dimension_numbers=dn,
                                 precision=hi)
    h = bn(h, params["g3"], params["b3"])

    if stride == 1:
        if Cin != Cout:
            wsc = params["wsc"].reshape(Cout, Cin, 1, 1)
            s = lax.conv_general_dilated(x, wsc, (1, 1), "VALID",
                                         dimension_numbers=dn, precision=hi)
            s = bn(s, params["gsc"], params["bsc"])
        else:
            s = x
        h = h + s
    return h


def make_params(key, Cin, Cmid, Cout):
    ks = jax.random.split(key, 12)
    return {
        # conv1.weight (Cmid, Cin, 1, 1) -> (Cmid, Cin)
        "w1": 0.5 * jax.random.normal(ks[0], (Cmid, Cin), jnp.float32),
        "g1": 1.0 + 0.1 * jax.random.normal(ks[1], (Cmid, 1), jnp.float32),
        "b1": 0.1 * jax.random.normal(ks[2], (Cmid, 1), jnp.float32),
        # conv2.weight (Cmid, 1, 3, 3) -> (Cmid, 9) with k = kh*3 + kw
        "w2": 0.5 * jax.random.normal(ks[3], (Cmid, 9), jnp.float32),
        "g2": 1.0 + 0.1 * jax.random.normal(ks[4], (Cmid, 1), jnp.float32),
        "b2": 0.1 * jax.random.normal(ks[5], (Cmid, 1), jnp.float32),
        # conv3.weight (Cout, Cmid, 1, 1) -> (Cout, Cmid)
        "w3": 0.5 * jax.random.normal(ks[6], (Cout, Cmid), jnp.float32),
        "g3": 1.0 + 0.1 * jax.random.normal(ks[7], (Cout, 1), jnp.float32),
        "b3": 0.1 * jax.random.normal(ks[8], (Cout, 1), jnp.float32),
        # shortcut conv (Cout, Cin, 1, 1) -> (Cout, Cin)
        "wsc": 0.5 * jax.random.normal(ks[9], (Cout, Cin), jnp.float32),
        "gsc": 1.0 + 0.1 * jax.random.normal(ks[10], (Cout, 1), jnp.float32),
        "bsc": 0.1 * jax.random.normal(ks[11], (Cout, 1), jnp.float32),
    }


if __name__ == "__main__":
    key = jax.random.PRNGKey(0)
    configs = [
        # (N, Cin, H, W, expansion, Cout, stride)
        (2, 4, 16, 16, 2, 8, 1),   # projection shortcut (Cin != Cout)
        (2, 8, 16, 16, 2, 8, 1),   # identity shortcut  (Cin == Cout)
        (2, 4, 16, 16, 2, 8, 2),   # strided, no shortcut
    ]
    for idx, (N, Cin, H, W, expansion, Cout, stride) in enumerate(configs):
        kp, kx, key = jax.random.split(key, 3)
        Cmid = expansion * Cin
        params = make_params(kp, Cin, Cmid, Cout)
        x = jax.random.normal(kx, (N, Cin, H, W), jnp.float32)

        out = jax.block_until_ready(block_forward(x, params, stride))
        ref = block_ref_nchw(x, params, stride)

        Ho = (H - 1) // stride + 1
        Wo = (W - 1) // stride + 1
        assert out.shape == (N, Cout, Ho, Wo), (idx, out.shape, (N, Cout, Ho, Wo))
        max_err = float(jnp.max(jnp.abs(out - ref)))
        assert jnp.allclose(out, ref, atol=5e-2, rtol=5e-2), (idx, max_err)

    print("KERNEL_OK")
</pallas_src>

<mosaic_0001>
module attributes {stable_mosaic.version = 11 : i64} {
  func.func @kernel(%arg0: i32, %arg1: memref<2x4x256xf32, #tpu.memory_space<vmem>>, %arg2: memref<2x256xf32, #tpu.memory_space<vmem>>, %arg3: memref<8x4xf32, #tpu.memory_space<vmem>>, %arg4: memref<8x1xf32, #tpu.memory_space<vmem>>, %arg5: memref<8x1xf32, #tpu.memory_space<vmem>>, %arg6: memref<8x9xf32, #tpu.memory_space<vmem>>, %arg7: memref<8x1xf32, #tpu.memory_space<vmem>>, %arg8: memref<8x1xf32, #tpu.memory_space<vmem>>, %arg9: memref<8x8xf32, #tpu.memory_space<vmem>>, %arg10: memref<8x1xf32, #tpu.memory_space<vmem>>, %arg11: memref<8x1xf32, #tpu.memory_space<vmem>>, %arg12: memref<8x4xf32, #tpu.memory_space<vmem>>, %arg13: memref<8x1xf32, #tpu.memory_space<vmem>>, %arg14: memref<8x1xf32, #tpu.memory_space<vmem>>, %arg15: memref<2x8x256xf32, #tpu.memory_space<vmem>>, %arg16: memref<2x8x512xf32, #tpu.memory_space<vmem>>) attributes {dimension_semantics = [#tpu.dimension_semantics<arbitrary>], iteration_bounds = array<i64: 1>, scalar_prefetch = 0 : i64, scratch_operands = 1 : i64, tpu.core_type = #tpu.core_type<tc>, window_params = [{pipeline_mode = #tpu.pipeline_mode<synchronous>, transform_indices = @transform_0, window_bounds = array<i64: 2, 4, 256>}, {pipeline_mode = #tpu.pipeline_mode<synchronous>, transform_indices = @transform_1, window_bounds = array<i64: 2, 256>}, {pipeline_mode = #tpu.pipeline_mode<synchronous>, transform_indices = @transform_2, window_bounds = array<i64: 8, 4>}, {pipeline_mode = #tpu.pipeline_mode<synchronous>, transform_indices = @transform_3, window_bounds = array<i64: 8, 1>}, {pipeline_mode = #tpu.pipeline_mode<synchronous>, transform_indices = @transform_4, window_bounds = array<i64: 8, 1>}, {pipeline_mode = #tpu.pipeline_mode<synchronous>, transform_indices = @transform_5, window_bounds = array<i64: 8, 9>}, {pipeline_mode = #tpu.pipeline_mode<synchronous>, transform_indices = @transform_6, window_bounds = array<i64: 8, 1>}, {pipeline_mode = #tpu.pipeline_mode<synchronous>, transform_indices = @transform_7, window_bounds = array<i64: 8, 1>}, {pipeline_mode = #tpu.pipeline_mode<synchronous>, transform_indices = @transform_8, window_bounds = array<i64: 8, 8>}, {pipeline_mode = #tpu.pipeline_mode<synchronous>, transform_indices = @transform_9, window_bounds = array<i64: 8, 1>}, {pipeline_mode = #tpu.pipeline_mode<synchronous>, transform_indices = @transform_10, window_bounds = array<i64: 8, 1>}, {pipeline_mode = #tpu.pipeline_mode<synchronous>, transform_indices = @transform_11, window_bounds = array<i64: 8, 4>}, {pipeline_mode = #tpu.pipeline_mode<synchronous>, transform_indices = @transform_12, window_bounds = array<i64: 8, 1>}, {pipeline_mode = #tpu.pipeline_mode<synchronous>, transform_indices = @transform_13, window_bounds = array<i64: 8, 1>}, {pipeline_mode = #tpu.pipeline_mode<synchronous>, transform_indices = @transform_14, window_bounds = array<i64: 2, 8, 256>}]} {
    %c0 = arith.constant 0 : index
    %c0_0 = arith.constant 0 : index
    %0 = vector.load %arg3[%c0, %c0_0] : memref<8x4xf32, #tpu.memory_space<vmem>>, vector<8x4xf32>
    %c0_1 = arith.constant 0 : index
    %c0_2 = arith.constant 0 : index
    %c0_3 = arith.constant 0 : index
    %1 = vector.load %arg1[%c0_1, %c0_2, %c0_3] : memref<2x4x256xf32, #tpu.memory_space<vmem>>, vector<1x4x256xf32>
    %2 = vector.shape_cast %1 : vector<1x4x256xf32> to vector<4x256xf32>
    %c1 = arith.constant 1 : index
    %c0_4 = arith.constant 0 : index
    %c0_5 = arith.constant 0 : index
    %3 = vector.load %arg1[%c1, %c0_4, %c0_5] : memref<2x4x256xf32, #tpu.memory_space<vmem>>, vector<1x4x256xf32>
    %4 = vector.shape_cast %3 : vector<1x4x256xf32> to vector<4x256xf32>
    %cst = arith.constant 0.000000e+00 : f32
    %5 = vector.broadcast %cst : f32 to vector<8x1xf32>
    %cst_6 = arith.constant 0.000000e+00 : f32
    %6 = vector.broadcast %cst_6 : f32 to vector<8x1xf32>
    %cst_7 = arith.constant dense<0.000000e+00> : vector<8x256xf32>
    %7 = tpu.matmul %0, %2, %cst_7 {dimension_numbers = #tpu.dot_dimension_numbers<[1], [0], [0], [1], [0, 0, 1, 1], [], []>} : vector<8x4xf32>, vector<4x256xf32>, vector<8x256xf32> -> vector<8x256xf32>
    %cst_8 = arith.constant dense<0.000000e+00> : vector<8xf32>
    %8 = vector.multi_reduction <add>, %7, %cst_8 [1] : vector<8x256xf32> to vector<8xf32>
    %9 = vector.shape_cast %8 : vector<8xf32> to vector<8x1xf32>
    %10 = arith.addf %5, %9 : vector<8x1xf32>
    %11 = arith.mulf %7, %7 : vector<8x256xf32>
    %cst_9 = arith.constant dense<0.000000e+00> : vector<8xf32>
    %12 = vector.multi_reduction <add>, %11, %cst_9 [1] : vector<8x256xf32> to vector<8xf32>
    %13 = vector.shape_cast %12 : vector<8xf32> to vector<8x1xf32>
    %14 = arith.addf %6, %13 : vector<8x1xf32>
    %cst_10 = arith.constant dense<0.000000e+00> : vector<8x256xf32>
    %15 = tpu.matmul %0, %4, %cst_10 {dimension_numbers = #tpu.dot_dimension_numbers<[1], [0], [0], [1], [0, 0, 1, 1], [], []>} : vector<8x4xf32>, vector<4x256xf32>, vector<8x256xf32> -> vector<8x256xf32>
    %cst_11 = arith.constant dense<0.000000e+00> : vector<8xf32>
    %16 = vector.multi_reduction <add>, %15, %cst_11 [1] : vector<8x256xf32> to vector<8xf32>
    %17 = vector.shape_cast %16 : vector<8xf32> to vector<8x1xf32>
    %18 = arith.addf %10, %17 : vector<8x1xf32>
    %19 = arith.mulf %15, %15 : vector<8x256xf32>
    %cst_12 = arith.constant dense<0.000000e+00> : vector<8xf32>
    %20 = vector.multi_reduction <add>, %19, %cst_12 [1] : vector<8x256xf32> to vector<8xf32>
    %21 = vector.shape_cast %20 : vector<8xf32> to vector<8x1xf32>
    %22 = arith.addf %14, %21 : vector<8x1xf32>
    %cst_13 = arith.constant 5.120000e+02 : f32
    %23 = vector.broadcast %cst_13 : f32 to vector<8x1xf32>
    %24 = arith.divf %18, %23 : vector<8x1xf32>
    %cst_14 = arith.constant 5.120000e+02 : f32
    %25 = vector.broadcast %cst_14 : f32 to vector<8x1xf32>
    %26 = arith.divf %22, %25 : vector<8x1xf32>
    %27 = arith.mulf %24, %24 : vector<8x1xf32>
    %28 = arith.subf %26, %27 : vector<8x1xf32>
    %cst_15 = arith.constant 0.000000e+00 : f32
    %29 = vector.broadcast %cst_15 : f32 to vector<8x1xf32>
    %30 = arith.maximumf %28, %29 : vector<8x1xf32>
    %c0_16 = arith.constant 0 : index
    %c0_17 = arith.constant 0 : index
    %31 = vector.load %arg4[%c0_16, %c0_17] : memref<8x1xf32, #tpu.memory_space<vmem>>, vector<8x1xf32>
    %cst_18 = arith.constant 9.99999974E-6 : f32
    %32 = vector.broadcast %cst_18 : f32 to vector<8x1xf32>
    %33 = arith.addf %30, %32 : vector<8x1xf32>
    %34 = math.rsqrt %33 : vector<8x1xf32>
    %35 = arith.mulf %31, %34 : vector<8x1xf32>
    %c0_19 = arith.constant 0 : index
    %c0_20 = arith.constant 0 : index
    %36 = vector.load %arg5[%c0_19, %c0_20] : memref<8x1xf32, #tpu.memory_space<vmem>>, vector<8x1xf32>
    %37 = arith.mulf %24, %35 : vector<8x1xf32>
    %38 = arith.subf %36, %37 : vector<8x1xf32>
    %cst_21 = arith.constant 0.000000e+00 : f32
    %39 = vector.broadcast %cst_21 : f32 to vector<2x8x128xf32>
    %c0_22 = arith.constant 0 : index
    %c0_23 = arith.constant 0 : index
    %c0_24 = arith.constant 0 : index
    %40 = vector.load %arg16[%c0_22, %c0_23, %c0_24] : memref<2x8x512xf32, #tpu.memory_space<vmem>>, vector<2x8x128xf32>
    tpu.vector_store %arg16[%c0_22, %c0_23, %c0_24], %39 {strides = array<i32>} : memref<2x8x512xf32, #tpu.memory_space<vmem>>, vector<2x8x128xf32>,
    %c0_25 = arith.constant 0 : index
    %c0_26 = arith.constant 0 : index
    %c384 = arith.constant 384 : index
    %41 = vector.load %arg16[%c0_25, %c0_26, %c384] : memref<2x8x512xf32, #tpu.memory_space<vmem>>, vector<2x8x128xf32>
    tpu.vector_store %arg16[%c0_25, %c0_26, %c384], %39 {strides = array<i32>} : memref<2x8x512xf32, #tpu.memory_space<vmem>>, vector<2x8x128xf32>,
    %42 = vector.broadcast %35 : vector<8x1xf32> to vector<8x256xf32>
    %43 = arith.mulf %7, %42 : vector<8x256xf32>
    %44 = vector.broadcast %38 : vector<8x1xf32> to vector<8x256xf32>
    %45 = arith.addf %43, %44 : vector<8x256xf32>
    %cst_27 = arith.constant 0.000000e+00 : f32
    %46 = vector.broadcast %cst_27 : f32 to vector<8x256xf32>
    %47 = arith.maximumf %45, %46 : vector<8x256xf32>
    %c0_28 = arith.constant 0 : index
    %c0_29 = arith.constant 0 : index
    %c128 = arith.constant 128 : index
    %48 = vector.load %arg16[%c0_28, %c0_29, %c128] : memref<2x8x512xf32, #tpu.memory_space<vmem>>, vector<1x8x256xf32>
    %49 = vector.shape_cast %48 : vector<1x8x256xf32> to vector<8x256xf32>
    %50 = vector.shape_cast %47 : vector<8x256xf32> to vector<1x8x256xf32>
    tpu.vector_store %arg16[%c0_28, %c0_29, %c128], %50 {strides = array<i32>} : memref<2x8x512xf32, #tpu.memory_space<vmem>>, vector<1x8x256xf32>,
    %51 = vector.broadcast %35 : vector<8x1xf32> to vector<8x256xf32>
    %52 = arith.mulf %15, %51 : vector<8x256xf32>
    %53 = vector.broadcast %38 : vector<8x1xf32> to vector<8x256xf32>
    %54 = arith.addf %52, %53 : vector<8x256xf32>
    %cst_30 = arith.constant 0.000000e+00 : f32
    %55 = vector.broadcast %cst_30 : f32 to vector<8x256xf32>
    %56 = arith.maximumf %54, %55 : vector<8x256xf32>
    %c1_31 = arith.constant 1 : index
    %c0_32 = arith.constant 0 : index
    %c128_33 = arith.constant 128 : index
    %57 = vector.load %arg16[%c1_31, %c0_32, %c128_33] : memref<2x8x512xf32, #tpu.memory_space<vmem>>, vector<1x8x256xf32>
    %58 = vector.shape_cast %57 : vector<1x8x256xf32> to vector<8x256xf32>
    %59 = vector.shape_cast %56 : vector<8x256xf32> to vector<1x8x256xf32>
    tpu.vector_store %arg16[%c1_31, %c0_32, %c128_33], %59 {strides = array<i32>} : memref<2x8x512xf32, #tpu.memory_space<vmem>>, vector<1x8x256xf32>,
    %c0_34 = arith.constant 0 : index
    %c0_35 = arith.constant 0 : index
    %60 = vector.load %arg6[%c0_34, %c0_35] : memref<8x9xf32, #tpu.memory_space<vmem>>, vector<8x9xf32>
    %c0_36 = arith.constant 0 : index
    %c0_37 = arith.constant 0 : index
    %61 = vector.load %arg2[%c0_36, %c0_37] : memref<2x256xf32, #tpu.memory_space<vmem>>, vector<2x256xf32>
    %62 = vector.extract_strided_slice %61 {offsets = [0, 0], sizes = [1, 256], strides = [1, 1]} : vector<2x256xf32> to vector<1x256xf32>
    %63 = vector.shape_cast %62 : vector<1x256xf32> to vector<1x1x256xf32>
    %64 = vector.extract_strided_slice %61 {offsets = [1, 0], sizes = [1, 256], strides = [1, 1]} : vector<2x256xf32> to vector<1x256xf32>
    %65 = vector.shape_cast %64 : vector<1x256xf32> to vector<1x1x256xf32>
    %c0_38 = arith.constant 0 : index
    %c0_39 = arith.constant 0 : index
    %c128_40 = arith.constant 128 : index
    %66 = vector.load %arg16[%c0_38, %c0_39, %c128_40] : memref<2x8x512xf32, #tpu.memory_space<vmem>>, vector<2x8x256xf32>
    %67 = vector.extract_strided_slice %60 {offsets = [0, 4], sizes = [8, 1], strides = [1, 1]} : vector<8x9xf32> to vector<8x1xf32>
    %68 = vector.shape_cast %67 : vector<8x1xf32> to vector<1x8x1xf32>
    %69 = vector.broadcast %68 : vector<1x8x1xf32> to vector<2x8x256xf32>
    %70 = arith.mulf %66, %69 : vector<2x8x256xf32>
    %c0_41 = arith.constant 0 : index
    %c0_42 = arith.constant 0 : index
    %c111 = arith.constant 111 : index
    %71 = vector.load %arg16[%c0_41, %c0_42, %c111] : memref<2x8x512xf32, #tpu.memory_space<vmem>>, vector<2x8x256xf32>
    %72 = vector.broadcast %63 : vector<1x1x256xf32> to vector<2x8x256xf32>
    %73 = arith.mulf %71, %72 : vector<2x8x256xf32>
    %74 = vector.extract_strided_slice %60 {offsets = [0, 0], sizes = [8, 1], strides = [1, 1]} : vector<8x9xf32> to vector<8x1xf32>
    %75 = vector.shape_cast %74 : vector<8x1xf32> to vector<1x8x1xf32>
    %76 = vector.broadcast %75 : vector<1x8x1xf32> to vector<2x8x256xf32>
    %77 = arith.mulf %73, %76 : vector<2x8x256xf32>
    %78 = arith.addf %70, %77 : vector<2x8x256xf32>
    %c0_43 = arith.constant 0 : index
    %c0_44 = arith.constant 0 : index
    %c112 = arith.constant 112 : index
    %79 = vector.load %arg16[%c0_43, %c0_44, %c112] : memref<2x8x512xf32, #tpu.memory_space<vmem>>, vector<2x8x256xf32>
    %80 = vector.extract_strided_slice %60 {offsets = [0, 1], sizes = [8, 1], strides = [1, 1]} : vector<8x9xf32> to vector<8x1xf32>
    %81 = vector.shape_cast %80 : vector<8x1xf32> to vector<1x8x1xf32>
    %82 = vector.broadcast %81 : vector<1x8x1xf32> to vector<2x8x256xf32>
    %83 = arith.mulf %79, %82 : vector<2x8x256xf32>
    %84 = arith.addf %78, %83 : vector<2x8x256xf32>
    %c0_45 = arith.constant 0 : index
    %c0_46 = arith.constant 0 : index
    %c113 = arith.constant 113 : index
    %85 = vector.load %arg16[%c0_45, %c0_46, %c113] : memref<2x8x512xf32, #tpu.memory_space<vmem>>, vector<2x8x256xf32>
    %86 = vector.broadcast %65 : vector<1x1x256xf32> to vector<2x8x256xf32>
    %87 = arith.mulf %85, %86 : vector<2x8x256xf32>
    %88 = vector.extract_strided_slice %60 {offsets = [0, 2], sizes = [8, 1], strides = [1, 1]} : vector<8x9xf32> to vector<8x1xf32>
    %89 = vector.shape_cast %88 : vector<8x1xf32> to vector<1x8x1xf32>
    %90 = vector.broadcast %89 : vector<1x8x1xf32> to vector<2x8x256xf32>
    %91 = arith.mulf %87, %90 : vector<2x8x256xf32>
    %92 = arith.addf %84, %91 : vector<2x8x256xf32>
    %c0_47 = arith.constant 0 : index
    %c0_48 = arith.constant 0 : index
    %c127 = arith.constant 127 : index
    %93 = vector.load %arg16[%c0_47, %c0_48, %c127] : memref<2x8x512xf32, #tpu.memory_space<vmem>>, vector<2x8x256xf32>
    %94 = vector.broadcast %63 : vector<1x1x256xf32> to vector<2x8x256xf32>
    %95 = arith.mulf %93, %94 : vector<2x8x256xf32>
    %96 = vector.extract_strided_slice %60 {offsets = [0, 3], sizes = [8, 1], strides = [1, 1]} : vector<8x9xf32> to vector<8x1xf32>
    %97 = vector.shape_cast %96 : vector<8x1xf32> to vector<1x8x1xf32>
    %98 = vector.broadcast %97 : vector<1x8x1xf32> to vector<2x8x256xf32>
    %99 = arith.mulf %95, %98 : vector<2x8x256xf32>
    %100 = arith.addf %92, %99 : vector<2x8x256xf32>
    %c0_49 = arith.constant 0 : index
    %c0_50 = arith.constant 0 : index
    %c129 = arith.constant 129 : index
    %101 = vector.load %arg16[%c0_49, %c0_50, %c129] : memref<2x8x512xf32, #tpu.memory_space<vmem>>, vector<2x8x256xf32>
    %102 = vector.broadcast %65 : vector<1x1x256xf32> to vector<2x8x256xf32>
    %103 = arith.mulf %101, %102 : vector<2x8x256xf32>
    %104 = vector.extract_strided_slice %60 {offsets = [0, 5], sizes = [8, 1], strides = [1, 1]} : vector<8x9xf32> to vector<8x1xf32>
    %105 = vector.shape_cast %104 : vector<8x1xf32> to vector<1x8x1xf32>
    %106 = vector.broadcast %105 : vector<1x8x1xf32> to vector<2x8x256xf32>
    %107 = arith.mulf %103, %106 : vector<2x8x256xf32>
    %108 = arith.addf %100, %107 : vector<2x8x256xf32>
    %c0_51 = arith.constant 0 : index
    %c0_52 = arith.constant 0 : index
    %c143 = arith.constant 143 : index
    %109 = vector.load %arg16[%c0_51, %c0_52, %c143] : memref<2x8x512xf32, #tpu.memory_space<vmem>>, vector<2x8x256xf32>
    %110 = vector.broadcast %63 : vector<1x1x256xf32> to vector<2x8x256xf32>
    %111 = arith.mulf %109, %110 : vector<2x8x256xf32>
    %112 = vector.extract_strided_slice %60 {offsets = [0, 6], sizes = [8, 1], strides = [1, 1]} : vector<8x9xf32> to vector<8x1xf32>
    %113 = vector.shape_cast %112 : vector<8x1xf32> to vector<1x8x1xf32>
    %114 = vector.broadcast %113 : vector<1x8x1xf32> to vector<2x8x256xf32>
    %115 = arith.mulf %111, %114 : vector<2x8x256xf32>
    %116 = arith.addf %108, %115 : vector<2x8x256xf32>
    %c0_53 = arith.constant 0 : index
    %c0_54 = arith.constant 0 : index
    %c144 = arith.constant 144 : index
    %117 = vector.load %arg16[%c0_53, %c0_54, %c144] : memref<2x8x512xf32, #tpu.memory_space<vmem>>, vector<2x8x256xf32>
    %118 = vector.extract_strided_slice %60 {offsets = [0, 7], sizes = [8, 1], strides = [1, 1]} : vector<8x9xf32> to vector<8x1xf32>
    %119 = vector.shape_cast %118 : vector<8x1xf32> to vector<1x8x1xf32>
    %120 = vector.broadcast %119 : vector<1x8x1xf32> to vector<2x8x256xf32>
    %121 = arith.mulf %117, %120 : vector<2x8x256xf32>
    %122 = arith.addf %116, %121 : vector<2x8x256xf32>
    %c0_55 = arith.constant 0 : index
    %c0_56 = arith.constant 0 : index
    %c145 = arith.constant 145 : index
    %123 = vector.load %arg16[%c0_55, %c0_56, %c145] : memref<2x8x512xf32, #tpu.memory_space<vmem>>, vector<2x8x256xf32>
    %124 = vector.broadcast %65 : vector<1x1x256xf32> to vector<2x8x256xf32>
    %125 = arith.mulf %123, %124 : vector<2x8x256xf32>
    %126 = vector.extract_strided_slice %60 {offsets = [0, 8], sizes = [8, 1], strides = [1, 1]} : vector<8x9xf32> to vector<8x1xf32>
    %127 = vector.shape_cast %126 : vector<8x1xf32> to vector<1x8x1xf32>
    %128 = vector.broadcast %127 : vector<1x8x1xf32> to vector<2x8x256xf32>
    %129 = arith.mulf %125, %128 : vector<2x8x256xf32>
    %130 = arith.addf %122, %129 : vector<2x8x256xf32>
    %cst_57 = arith.constant 0.000000e+00 : f32
    %131 = vector.broadcast %cst_57 : f32 to vector<8x1xf32>
    %cst_58 = arith.constant 0.000000e+00 : f32
    %132 = vector.broadcast %cst_58 : f32 to vector<8x1xf32>
    %133 = vector.extract_strided_slice %130 {offsets = [0, 0, 0], sizes = [1, 8, 256], strides = [1, 1, 1]} : vector<2x8x256xf32> to vector<1x8x256xf32>
    %134 = vector.shape_cast %133 : vector<1x8x256xf32> to vector<8x256xf32>
    %cst_59 = arith.constant dense<0.000000e+00> : vector<8xf32>
    %135 = vector.multi_reduction <add>, %134, %cst_59 [1] : vector<8x256xf32> to vector<8xf32>
    %136 = vector.shape_cast %135 : vector<8xf32> to vector<8x1xf32>
    %137 = arith.addf %131, %136 : vector<8x1xf32>
    %138 = arith.mulf %134, %134 : vector<8x256xf32>
    %cst_60 = arith.constant dense<0.000000e+00> : vector<8xf32>
    %139 = vector.multi_reduction <add>, %138, %cst_60 [1] : vector<8x256xf32> to vector<8xf32>
    %140 = vector.shape_cast %139 : vector<8xf32> to vector<8x1xf32>
    %141 = arith.addf %132, %140 : vector<8x1xf32>
    %142 = vector.extract_strided_slice %130 {offsets = [1, 0, 0], sizes = [1, 8, 256], strides = [1, 1, 1]} : vector<2x8x256xf32> to vector<1x8x256xf32>
    %143 = vector.shape_cast %142 : vector<1x8x256xf32> to vector<8x256xf32>
    %cst_61 = arith.constant dense<0.000000e+00> : vector<8xf32>
    %144 = vector.multi_reduction <add>, %143, %cst_61 [1] : vector<8x256xf32> to vector<8xf32>
    %145 = vector.shape_cast %144 : vector<8xf32> to vector<8x1xf32>
    %146 = arith.addf %137, %145 : vector<8x1xf32>
    %147 = arith.mulf %143, %143 : vector<8x256xf32>
    %cst_62 = arith.constant dense<0.000000e+00> : vector<8xf32>
    %148 = vector.multi_reduction <add>, %147, %cst_62 [1] : vector<8x256xf32> to vector<8xf32>
    %149 = vector.shape_cast %148 : vector<8xf32> to vector<8x1xf32>
    %150 = arith.addf %141, %149 : vector<8x1xf32>
    %cst_63 = arith.constant 5.120000e+02 : f32
    %151 = vector.broadcast %cst_63 : f32 to vector<8x1xf32>
    %152 = arith.divf %146, %151 : vector<8x1xf32>
    %cst_64 = arith.constant 5.120000e+02 : f32
    %153 = vector.broadcast %cst_64 : f32 to vector<8x1xf32>
    %154 = arith.divf %150, %153 : vector<8x1xf32>
    %155 = arith.mulf %152, %152 : vector<8x1xf32>
    %156 = arith.subf %154, %155 : vector<8x1xf32>
    %cst_65 = arith.constant 0.000000e+00 : f32
    %157 = vector.broadcast %cst_65 : f32 to vector<8x1xf32>
    %158 = arith.maximumf %156, %157 : vector<8x1xf32>
    %c0_66 = arith.constant 0 : index
    %c0_67 = arith.constant 0 : index
    %159 = vector.load %arg7[%c0_66, %c0_67] : memref<8x1xf32, #tpu.memory_space<vmem>>, vector<8x1xf32>
    %cst_68 = arith.constant 9.99999974E-6 : f32
    %160 = vector.broadcast %cst_68 : f32 to vector<8x1xf32>
    %161 = arith.addf %158, %160 : vector<8x1xf32>
    %162 = math.rsqrt %161 : vector<8x1xf32>
    %163 = arith.mulf %159, %162 : vector<8x1xf32>
    %c0_69 = arith.constant 0 : index
    %c0_70 = arith.constant 0 : index
    %164 = vector.load %arg8[%c0_69, %c0_70] : memref<8x1xf32, #tpu.memory_space<vmem>>, vector<8x1xf32>
    %165 = arith.mulf %152, %163 : vector<8x1xf32>
    %166 = arith.subf %164, %165 : vector<8x1xf32>
    %c0_71 = arith.constant 0 : index
    %c0_72 = arith.constant 0 : index
    %167 = vector.load %arg9[%c0_71, %c0_72] : memref<8x8xf32, #tpu.memory_space<vmem>>, vector<8x8xf32>
    %cst_73 = arith.constant 0.000000e+00 : f32
    %168 = vector.broadcast %cst_73 : f32 to vector<8x1xf32>
    %cst_74 = arith.constant 0.000000e+00 : f32
    %169 = vector.broadcast %cst_74 : f32 to vector<8x1xf32>
    %c0_75 = arith.constant 0 : index
    %c0_76 = arith.constant 0 : index
    %170 = vector.load %arg12[%c0_75, %c0_76] : memref<8x4xf32, #tpu.memory_space<vmem>>, vector<8x4xf32>
    %cst_77 = arith.constant 0.000000e+00 : f32
    %171 = vector.broadcast %cst_77 : f32 to vector<8x1xf32>
    %cst_78 = arith.constant 0.000000e+00 : f32
    %172 = vector.broadcast %cst_78 : f32 to vector<8x1xf32>
    %173 = vector.broadcast %163 : vector<8x1xf32> to vector<8x256xf32>
    %174 = arith.mulf %134, %173 : vector<8x256xf32>
    %175 = vector.broadcast %166 : vector<8x1xf32> to vector<8x256xf32>
    %176 = arith.addf %174, %175 : vector<8x256xf32>
    %cst_79 = arith.constant 0.000000e+00 : f32
    %177 = vector.broadcast %cst_79 : f32 to vector<8x256xf32>
    %178 = arith.maximumf %176, %177 : vector<8x256xf32>
    %cst_80 = arith.constant dense<0.000000e+00> : vector<8x256xf32>
    %179 = tpu.matmul %167, %178, %cst_80 {dimension_numbers = #tpu.dot_dimension_numbers<[1], [0], [0], [1], [0, 0, 1, 1], [], []>} : vector<8x8xf32>, vector<8x256xf32>, vector<8x256xf32> -> vector<8x256xf32>
    %cst_81 = arith.constant dense<0.000000e+00> : vector<8xf32>
    %180 = vector.multi_reduction <add>, %179, %cst_81 [1] : vector<8x256xf32> to vector<8xf32>
    %181 = vector.shape_cast %180 : vector<8xf32> to vector<8x1xf32>
    %182 = arith.addf %168, %181 : vector<8x1xf32>
    %183 = arith.mulf %179, %179 : vector<8x256xf32>
    %cst_82 = arith.constant dense<0.000000e+00> : vector<8xf32>
    %184 = vector.multi_reduction <add>, %183, %cst_82 [1] : vector<8x256xf32> to vector<8xf32>
    %185 = vector.shape_cast %184 : vector<8xf32> to vector<8x1xf32>
    %186 = arith.addf %169, %185 : vector<8x1xf32>
    %cst_83 = arith.constant dense<0.000000e+00> : vector<8x256xf32>
    %187 = tpu.matmul %170, %2, %cst_83 {dimension_numbers = #tpu.dot_dimension_numbers<[1], [0], [0], [1], [0, 0, 1, 1], [], []>} : vector<8x4xf32>, vector<4x256xf32>, vector<8x256xf32> -> vector<8x256xf32>
    %cst_84 = arith.constant dense<0.000000e+00> : vector<8xf32>
    %188 = vector.multi_reduction <add>, %187, %cst_84 [1] : vector<8x256xf32> to vector<8xf32>
    %189 = vector.shape_cast %188 : vector<8xf32> to vector<8x1xf32>
    %190 = arith.addf %171, %189 : vector<8x1xf32>
    %191 = arith.mulf %187, %187 : vector<8x256xf32>
    %cst_85 = arith.constant dense<0.000000e+00> : vector<8xf32>
    %192 = vector.multi_reduction <add>, %191, %cst_85 [1] : vector<8x256xf32> to vector<8xf32>
    %193 = vector.shape_cast %192 : vector<8xf32> to vector<8x1xf32>
    %194 = arith.addf %172, %193 : vector<8x1xf32>
    %195 = vector.broadcast %163 : vector<8x1xf32> to vector<8x256xf32>
    %196 = arith.mulf %143, %195 : vector<8x256xf32>
    %197 = vector.broadcast %166 : vector<8x1xf32> to vector<8x256xf32>
    %198 = arith.addf %196, %197 : vector<8x256xf32>
    %cst_86 = arith.constant 0.000000e+00 : f32
    %199 = vector.broadcast %cst_86 : f32 to vector<8x256xf32>
    %200 = arith.maximumf %198, %199 : vector<8x256xf32>
    %cst_87 = arith.constant dense<0.000000e+00> : vector<8x256xf32>
    %201 = tpu.matmul %167, %200, %cst_87 {dimension_numbers = #tpu.dot_dimension_numbers<[1], [0], [0], [1], [0, 0, 1, 1], [], []>} : vector<8x8xf32>, vector<8x256xf32>, vector<8x256xf32> -> vector<8x256xf32>
    %cst_88 = arith.constant dense<0.000000e+00> : vector<8xf32>
    %202 = vector.multi_reduction <add>, %201, %cst_88 [1] : vector<8x256xf32> to vector<8xf32>
    %203 = vector.shape_cast %202 : vector<8xf32> to vector<8x1xf32>
    %204 = arith.addf %182, %203 : vector<8x1xf32>
    %205 = arith.mulf %201, %201 : vector<8x256xf32>
    %cst_89 = arith.constant dense<0.000000e+00> : vector<8xf32>
    %206 = vector.multi_reduction <add>, %205, %cst_89 [1] : vector<8x256xf32> to vector<8xf32>
    %207 = vector.shape_cast %206 : vector<8xf32> to vector<8x1xf32>
    %208 = arith.addf %186, %207 : vector<8x1xf32>
    %cst_90 = arith.constant dense<0.000000e+00> : vector<8x256xf32>
    %209 = tpu.matmul %170, %4, %cst_90 {dimension_numbers = #tpu.dot_dimension_numbers<[1], [0], [0], [1], [0, 0, 1, 1], [], []>} : vector<8x4xf32>, vector<4x256xf32>, vector<8x256xf32> -> vector<8x256xf32>
    %cst_91 = arith.constant dense<0.000000e+00> : vector<8xf32>
    %210 = vector.multi_reduction <add>, %209, %cst_91 [1] : vector<8x256xf32> to vector<8xf32>
    %211 = vector.shape_cast %210 : vector<8xf32> to vector<8x1xf32>
    %212 = arith.addf %190, %211 : vector<8x1xf32>
    %213 = arith.mulf %209, %209 : vector<8x256xf32>
    %cst_92 = arith.constant dense<0.000000e+00> : vector<8xf32>
    %214 = vector.multi_reduction <add>, %213, %cst_92 [1] : vector<8x256xf32> to vector<8xf32>
    %215 = vector.shape_cast %214 : vector<8xf32> to vector<8x1xf32>
    %216 = arith.addf %194, %215 : vector<8x1xf32>
    %cst_93 = arith.constant 5.120000e+02 : f32
    %217 = vector.broadcast %cst_93 : f32 to vector<8x1xf32>
    %218 = arith.divf %204, %217 : vector<8x1xf32>
    %cst_94 = arith.constant 5.120000e+02 : f32
    %219 = vector.broadcast %cst_94 : f32 to vector<8x1xf32>
    %220 = arith.divf %208, %219 : vector<8x1xf32>
    %221 = arith.mulf %218, %218 : vector<8x1xf32>
    %222 = arith.subf %220, %221 : vector<8x1xf32>
    %cst_95 = arith.constant 0.000000e+00 : f32
    %223 = vector.broadcast %cst_95 : f32 to vector<8x1xf32>
    %224 = arith.maximumf %222, %223 : vector<8x1xf32>
    %c0_96 = arith.constant 0 : index
    %c0_97 = arith.constant 0 : index
    %225 = vector.load %arg10[%c0_96, %c0_97] : memref<8x1xf32, #tpu.memory_space<vmem>>, vector<8x1xf32>
    %cst_98 = arith.constant 9.99999974E-6 : f32
    %226 = vector.broadcast %cst_98 : f32 to vector<8x1xf32>
    %227 = arith.addf %224, %226 : vector<8x1xf32>
    %228 = math.rsqrt %227 : vector<8x1xf32>
    %229 = arith.mulf %225, %228 : vector<8x1xf32>
    %c0_99 = arith.constant 0 : index
    %c0_100 = arith.constant 0 : index
    %230 = vector.load %arg11[%c0_99, %c0_100] : memref<8x1xf32, #tpu.memory_space<vmem>>, vector<8x1xf32>
    %231 = arith.mulf %218, %229 : vector<8x1xf32>
    %232 = arith.subf %230, %231 : vector<8x1xf32>
    %cst_101 = arith.constant 5.120000e+02 : f32
    %233 = vector.broadcast %cst_101 : f32 to vector<8x1xf32>
    %234 = arith.divf %212, %233 : vector<8x1xf32>
    %cst_102 = arith.constant 5.120000e+02 : f32
    %235 = vector.broadcast %cst_102 : f32 to vector<8x1xf32>
    %236 = arith.divf %216, %235 : vector<8x1xf32>
    %237 = arith.mulf %234, %234 : vector<8x1xf32>
    %238 = arith.subf %236, %237 : vector<8x1xf32>
    %cst_103 = arith.constant 0.000000e+00 : f32
    %239 = vector.broadcast %cst_103 : f32 to vector<8x1xf32>
    %240 = arith.maximumf %238, %239 : vector<8x1xf32>
    %c0_104 = arith.constant 0 : index
    %c0_105 = arith.constant 0 : index
    %241 = vector.load %arg13[%c0_104, %c0_105] : memref<8x1xf32, #tpu.memory_space<vmem>>, vector<8x1xf32>
    %cst_106 = arith.constant 9.99999974E-6 : f32
    %242 = vector.broadcast %cst_106 : f32 to vector<8x1xf32>
    %243 = arith.addf %240, %242 : vector<8x1xf32>
    %244 = math.rsqrt %243 : vector<8x1xf32>
    %245 = arith.mulf %241, %244 : vector<8x1xf32>
    %c0_107 = arith.constant 0 : index
    %c0_108 = arith.constant 0 : index
    %246 = vector.load %arg14[%c0_107, %c0_108] : memref<8x1xf32, #tpu.memory_space<vmem>>, vector<8x1xf32>
    %247 = arith.mulf %234, %245 : vector<8x1xf32>
    %248 = arith.subf %246, %247 : vector<8x1xf32>
    %249 = vector.broadcast %229 : vector<8x1xf32> to vector<8x256xf32>
    %250 = arith.mulf %179, %249 : vector<8x256xf32>
    %251 = vector.broadcast %232 : vector<8x1xf32> to vector<8x256xf32>
    %252 = arith.addf %250, %251 : vector<8x256xf32>
    %253 = vector.broadcast %245 : vector<8x1xf32> to vector<8x256xf32>
    %254 = arith.mulf %187, %253 : vector<8x256xf32>
    %255 = vector.broadcast %248 : vector<8x1xf32> to vector<8x256xf32>
    %256 = arith.addf %254, %255 : vector<8x256xf32>
    %257 = arith.addf %252, %256 : vector<8x256xf32>
    %c0_109 = arith.constant 0 : index
    %c0_110 = arith.constant 0 : index
    %c0_111 = arith.constant 0 : index
    %258 = vector.load %arg15[%c0_109, %c0_110, %c0_111] : memref<2x8x256xf32, #tpu.memory_space<vmem>>, vector<1x8x256xf32>
    %259 = vector.shape_cast %258 : vector<1x8x256xf32> to vector<8x256xf32>
    %260 = vector.shape_cast %257 : vector<8x256xf32> to vector<1x8x256xf32>
    tpu.vector_store %arg15[%c0_109, %c0_110, %c0_111], %260 {strides = array<i32>} : memref<2x8x256xf32, #tpu.memory_space<vmem>>, vector<1x8x256xf32>,
    %261 = vector.broadcast %229 : vector<8x1xf32> to vector<8x256xf32>
    %262 = arith.mulf %201, %261 : vector<8x256xf32>
    %263 = vector.broadcast %232 : vector<8x1xf32> to vector<8x256xf32>
    %264 = arith.addf %262, %263 : vector<8x256xf32>
    %265 = vector.broadcast %245 : vector<8x1xf32> to vector<8x256xf32>
    %266 = arith.mulf %209, %265 : vector<8x256xf32>
    %267 = vector.broadcast %248 : vector<8x1xf32> to vector<8x256xf32>
    %268 = arith.addf %266, %267 : vector<8x256xf32>
    %269 = arith.addf %264, %268 : vector<8x256xf32>
    %c1_112 = arith.constant 1 : index
    %c0_113 = arith.constant 0 : index
    %c0_114 = arith.constant 0 : index
    %270 = vector.load %arg15[%c1_112, %c0_113, %c0_114] : memref<2x8x256xf32, #tpu.memory_space<vmem>>, vector<1x8x256xf32>
    %271 = vector.shape_cast %270 : vector<1x8x256xf32> to vector<8x256xf32>
    %272 = vector.shape_cast %269 : vector<8x256xf32> to vector<1x8x256xf32>
    tpu.vector_store %arg15[%c1_112, %c0_113, %c0_114], %272 {strides = array<i32>} : memref<2x8x256xf32, #tpu.memory_space<vmem>>, vector<1x8x256xf32>,
    return
  }
  func.func @transform_0(%arg0: i32) -> (i32, i32, i32) {
    %c0_i32 = arith.constant 0 : i32
    %c0_i32_0 = arith.constant 0 : i32
    %c0_i32_1 = arith.constant 0 : i32
    %c0_i32_2 = arith.constant 0 : i32
    return %c0_i32, %c0_i32_0, %c0_i32_1 : i32, i32, i32
  }
  func.func @transform_1(%arg0: i32) -> (i32, i32) {
    %c0_i32 = arith.constant 0 : i32
    %c0_i32_0 = arith.constant 0 : i32
    %c0_i32_1 = arith.constant 0 : i32
    return %c0_i32, %c0_i32_0 : i32, i32
  }
  func.func @transform_2(%arg0: i32) -> (i32, i32) {
    %c0_i32 = arith.constant 0 : i32
    %c0_i32_0 = arith.constant 0 : i32
    %c0_i32_1 = arith.constant 0 : i32
    return %c0_i32, %c0_i32_0 : i32, i32
  }
  func.func @transform_3(%arg0: i32) -> (i32, i32) {
    %c0_i32 = arith.constant 0 : i32
    %c0_i32_0 = arith.constant 0 : i32
    %c0_i32_1 = arith.constant 0 : i32
    return %c0_i32, %c0_i32_0 : i32, i32
  }
  func.func @transform_4(%arg0: i32) -> (i32, i32) {
    %c0_i32 = arith.constant 0 : i32
    %c0_i32_0 = arith.constant 0 : i32
    %c0_i32_1 = arith.constant 0 : i32
    return %c0_i32, %c0_i32_0 : i32, i32
  }
  func.func @transform_5(%arg0: i32) -> (i32, i32) {
    %c0_i32 = arith.constant 0 : i32
    %c0_i32_0 = arith.constant 0 : i32
    %c0_i32_1 = arith.constant 0 : i32
    return %c0_i32, %c0_i32_0 : i32, i32
  }
  func.func @transform_6(%arg0: i32) -> (i32, i32) {
    %c0_i32 = arith.constant 0 : i32
    %c0_i32_0 = arith.constant 0 : i32
    %c0_i32_1 = arith.constant 0 : i32
    return %c0_i32, %c0_i32_0 : i32, i32
  }
  func.func @transform_7(%arg0: i32) -> (i32, i32) {
    %c0_i32 = arith.constant 0 : i32
    %c0_i32_0 = arith.constant 0 : i32
    %c0_i32_1 = arith.constant 0 : i32
    return %c0_i32, %c0_i32_0 : i32, i32
  }
  func.func @transform_8(%arg0: i32) -> (i32, i32) {
    %c0_i32 = arith.constant 0 : i32
    %c0_i32_0 = arith.constant 0 : i32
    %c0_i32_1 = arith.constant 0 : i32
    return %c0_i32, %c0_i32_0 : i32, i32
  }
  func.func @transform_9(%arg0: i32) -> (i32, i32) {
    %c0_i32 = arith.constant 0 : i32
    %c0_i32_0 = arith.constant 0 : i32
    %c0_i32_1 = arith.constant 0 : i32
    return %c0_i32, %c0_i32_0 : i32, i32
  }
  func.func @transform_10(%arg0: i32) -> (i32, i32) {
    %c0_i32 = arith.constant 0 : i32
    %c0_i32_0 = arith.constant 0 : i32
    %c0_i32_1 = arith.constant 0 : i32
    return %c0_i32, %c0_i32_0 : i32, i32
  }
  func.func @transform_11(%arg0: i32) -> (i32, i32) {
    %c0_i32 = arith.constant 0 : i32
    %c0_i32_0 = arith.constant 0 : i32
    %c0_i32_1 = arith.constant 0 : i32
    return %c0_i32, %c0_i32_0 : i32, i32
  }
  func.func @transform_12(%arg0: i32) -> (i32, i32) {
    %c0_i32 = arith.constant 0 : i32
    %c0_i32_0 = arith.constant 0 : i32
    %c0_i32_1 = arith.constant 0 : i32
    return %c0_i32, %c0_i32_0 : i32, i32
  }
  func.func @transform_13(%arg0: i32) -> (i32, i32) {
    %c0_i32 = arith.constant 0 : i32
    %c0_i32_0 = arith.constant 0 : i32
    %c0_i32_1 = arith.constant 0 : i32
    return %c0_i32, %c0_i32_0 : i32, i32
  }
  func.func @transform_14(%arg0: i32) -> (i32, i32, i32) {
    %c0_i32 = arith.constant 0 : i32
    %c0_i32_0 = arith.constant 0 : i32
    %c0_i32_1 = arith.constant 0 : i32
    %c0_i32_2 = arith.constant 0 : i32
    return %c0_i32, %c0_i32_0, %c0_i32_1 : i32, i32, i32
  }
}

</mosaic_0001>

<bundles_post_ra>
// kernel: tpu_custom_call.1
= control target key start
LH: loop header
LB: loop body
LE: loop exit
PB: predicated region body
PF: predicated region fallthrough
CT: control target
= control target key end

     0   :  { %vm58_vm0 = vcmask 1043456   ;;  %v293_v2 = vlaneseq  ;;  %v1301_v4 = vmov 0.0   ;;  %vm54_vm1 = vcmask 31744   ;;  %s1865_s0 = inlined_call_operand.vmem [shape: f32[2,4,256], index: 0, kind: input, shape index: {}]   ;;  %s1866_s1 = inlined_call_operand.vmem [shape: f32[2,256], index: 1, kind: input, shape index: {}]   ;;  %s1867_s2 = inlined_call_operand.vmem [shape: f32[8,4], index: 2, kind: input, shape index: {}]   ;;  %s1868_s3 = inlined_call_operand.vmem [shape: f32[8,1], index: 3, kind: input, shape index: {}]   ;;  %s1869_s4 = inlined_call_operand.vmem [shape: f32[8,1], index: 4, kind: input, shape index: {}]   ;;  %s1870_s5 = inlined_call_operand.vmem [shape: f32[8,9], index: 5, kind: input, shape index: {}]   ;;  %s1871_s6 = inlined_call_operand.vmem [shape: f32[8,1], index: 6, kind: input, shape index: {}]   ;;  %s1872_s7 = inlined_call_operand.vmem [shape: f32[8,1], index: 7, kind: input, shape index: {}]   ;;  %s1873_s8 = inlined_call_operand.vmem [shape: f32[8,8], index: 8, kind: input, shape index: {}]   ;;  %s1874_s9 = inlined_call_operand.vmem [shape: f32[8,1], index: 9, kind: input, shape index: {}]   ;;  %s1875_s10 = inlined_call_operand.vmem [shape: f32[8,1], index: 10, kind: input, shape index: {}]   ;;  %s1876_s11 = inlined_call_operand.vmem [shape: f32[8,4], index: 11, kind: input, shape index: {}]   ;;  %s1877_s12 = inlined_call_operand.vmem [shape: f32[8,1], index: 12, kind: input, shape index: {}]   ;;  %s1878_s13 = inlined_call_operand.vmem [shape: f32[8,1], index: 13, kind: input, shape index: {}]   ;;  %s1879_s14 = inlined_call_operand.hbm [shape: f32[2,8,256], index: 14, kind: output, shape index: {}]  }
   0x1   :  { %v49_v0 = vld [vmem:[%s1865_s0] sm:$0xff]  ;;  %v1402_v1 = vld [vmem:[%s1865_s0 + $0x8] sm:$0xff]  ;;  %127 = vmatprep.mubr.f32.mxu0 %v1301_v4  ;;  %214 = vmatprep.mubr.f32.mxu1 %v1301_v4  ;;  %v1302_v7 = vmov 0  }
   0x2   :  { %v53_v3 = vcombine.high %v49_v0, %v49_v0  ;;  %v145_v5 = vcombine.high %v1402_v1, %v1402_v1  ;;  %v48_v6 = vld [vmem:[%s1867_s2] sm:$0xff]  ;;  %1258 = vset.pattern.permute.xlu1 %v1302_v7  ;;  %v294_v8 = vshrl.u32 %v293_v2, 7 }
   0x3   :  { %19 = vsyncpa [#allocation4], 0  ;;  %v1417_v9 = vld [vmem:[%s1870_s5] sm:$0xff]  ;;  %v1304_v14 = vmov 1   ;;  %v1305_v15 = vmov 3   ;;  %v1306_v34 = vmov 5  }
   0x4   :  { %1224 = vmatprep.subr.msk.mxu0 %vm58_vm0, %v53_v3  ;;  %1227 = vmatprep.subr.msk.mxu1 %vm58_vm0, %v145_v5  ;;  %v276_v10 = vld [vmem:[%s1866_s1] sm:$0xf]  ;;  %v295_v11 = vsub.s32 0, %v294_v8  ;;  %s1303_s1 = smov 111   ;;  %v299_v28 = vsub.s32 2, %v294_v8  ;;  %v412_v31 = vsub.s32 1, %v294_v8 }
   0x5   :  { %1225 = vmatpush1.msk.msra.mxu0 %vm58_vm0, %v49_v0  ;;  %1228 = vmatpush1.msk.msra.mxu1 %vm58_vm0, %v1402_v1  ;;  %v416_v33 = vsub.s32 3, %v294_v8  ;;  %v1307_v35 = vmov 2   ;;  %v1308_v39 = vmov 6   ;;  %s1309_s2 = smov 113   ;;  %v1310_v41 = vmov 8   ;;  %s1312_s5 = smov 127  }
   0x6   :  { %1226 = vmatmul.mubr.msk.f32.vlgmr.msra.gmra.mxu0 %vm54_vm1, %v48_v6  ;;  %1229 = vmatmul.mubr.msk.f32.vlgmr.msra.gmra.mxu1 %vm54_vm1, %v48_v6  ;;  %v296_v12 = vrot.slane %v276_v10, %v295_v11  ;;  %v300_v29 = vrot.slane %v276_v10, %v299_v28  ;;  %v413_v32 = vrot.slane %v276_v10, %v412_v31  ;;  %v1311_v43 = vmov 7   ;;  %s1313_s22 = smov 17   ;;  %s1314_s23 = smov 1   ;;  %v237_v2 = vld [vmem:[%s1868_s3] sm:$0xff] }
   0x7   :  { %329 = vperm.xlu1 %1258, %v1417_v9   ;;  %1231 = vmatprep.subr.msk.mxu1 %vm58_vm0, %v53_v3  ;;  %v417_v37 = vrot.slane %v276_v10, %v416_v33  ;;  %s1315_s24 = smov 15   ;;  %v1316_v46 = vmov 4   ;;  %s1317_s25 = smov 16   ;;  %vm317_vm2 = vcmask 908288   ;;  %vm434_vm3 = vcmask 924672  }
   0x8   :  { %1232 = vmatpush1.msk.msra.mxu1 %vm58_vm0, %v49_v0  ;;  %953 = vmatprep.mubr.f32.mxu1 %v1301_v4  ;;  %v1431_v13 = vrot.slane %v296_v12, %v295_v11  ;;  %v310_v30 = vrot.slane %v300_v29, %v295_v11  ;;  %v423_v36 = vrot.slane %v413_v32, %v412_v31  ;;  %s1318_s3 = smov 112   ;;  %vm490_vm4 = vcmask 1039360  }
   0x9   :  { %1235 = vmatprep.subr.msk.mxu1 %vm58_vm0, %v145_v5  ;;  %869 = vmatprep.mubr.f32.mxu0 %v1301_v4  ;;  %v427_v40 = vrot.slane %v417_v37, %v412_v31  ;;  %vm529_vm5 = vcmask 7168   ;;  %vm473_vm6 = vcmask 121856   ;;  %vm356_vm7 = vcmask 138240  }
   0xa   :  { %1261 = vset.pattern.permute.xlu0 %v1305_v15  ;;  %vm397_vm8 = vcmask 130048   ;;  %vm684_vm9 = vcmask 916480   ;;  %vm801_vm10 = vcmask 64512  }
   0xb   :  { %313 = vrot.lane.b32.xlu1 %v1431_v13, %s1303_s1 }
   0xc   :  { %1259 = vset.pattern.permute.xlu1 %v1304_v14 }
  0x82   :  { %v1462_v38 = vpop.permute.xlu1 %329 }
  0x86   :  { %v1466_v42 = vpop.permute.xlu1 %313 }
  0x87   :  { %v322_v44 = vmul.f32 0.0, %v1466_v42 }
  0x89   :  { %v332_v45 = vmul.f32 %v1462_v38, %v322_v44 }
  0xc6   :  { %v1437_v16 = vpop.f32.mrf.mxu0  ;;  %v1439_v17 = vpop.f32.mrf.mxu1 }
  0xc7   :  { %v138_v21 = vmul.f32 %v1437_v16, %v1437_v16  ;;  %v225_v24 = vmul.f32 %v1439_v17, %v1439_v17 }
  0xc8   :  { %v1441_v18 = vpop.f32.mrf.mxu0  ;;  %v1443_v19 = vpop.f32.mrf.mxu1 }
  0xc9   :  { %v134_v20 = vadd.f32 %v1441_v18, %v1437_v16  ;;  %v139_v22 = vmul.f32 %v1441_v18, %v1441_v18  ;;  %v226_v25 = vmul.f32 %v1443_v19, %v1443_v19  ;;  %v221_v26 = vadd.f32 %v1443_v19, %v1439_v17 }
  0xcb   :  { %135 = vadd.xlane.f32.xlu0 %v134_v20  ;;  %v140_v23 = vadd.f32 %v139_v22, %v138_v21  ;;  %v227_v27 = vadd.f32 %v226_v25, %v225_v24 }
  0xcd   :  { %141 = vadd.xlane.f32.xlu1 %v140_v23 }
  0xcf   :  { %222 = vadd.xlane.f32.xlu0 %v221_v26 }
  0xd1   :  { %228 = vadd.xlane.f32.xlu1 %v227_v27 }
  0xe2   :  { %315 = vrot.lane.b32.xlu1 %v310_v30, %s1303_s1 }
  0xe5   :  { %502 = vperm.xlu0 %1261, %v1417_v9  }
  0xe6   :  { %370 = vperm.xlu1 %1259, %v1417_v9  }
  0xe9   :  { %1262 = vset.pattern.permute.xlu0 %v1306_v34 }
  0xea   :  { %1260 = vset.pattern.permute.xlu1 %v1307_v35  ;;  %563 = vperm.xlu0 %1262, %v1417_v9  }
  0xeb   :  { %446 = vperm.xlu1 %1260, %v1417_v9  }
  0xee   :  { %1263 = vset.pattern.permute.xlu0 %v1308_v39 }
  0xef   :  { %430 = vrot.lane.b32.xlu1 %v423_v36, %s1309_s2  ;;  %617 = vperm.xlu0 %1263, %v1417_v9  }
  0xf0   :  { %1265 = vset.pattern.permute.xlu1 %v1310_v41 }
  0xf3   :  { %432 = vrot.lane.b32.xlu1 %v427_v40, %s1309_s2  ;;  %1264 = vset.pattern.permute.xlu0 %v1311_v43 }
  0xf4   :  { %657 = vperm.xlu0 %1264, %v1417_v9  }
  0xf7   :  { %486 = vrot.lane.b32.xlu1 %v1431_v13, %s1312_s5 }
  0xf8   :  { %699 = vrot.lane.b32.xlu0 %v427_v40, %s1313_s22 }
  0xf9   :  { %1267 = vset.pattern.permute.xlu0 %v1302_v7 }
  0xfb   :  { %488 = vrot.lane.b32.xlu1 %v310_v30, %s1312_s5 }
  0xfc   :  { %344 = vrot.lane.b32.xlu0 %v332_v45, %s1313_s22 }
  0xff   :  { %548 = vrot.lane.b32.xlu1 %v423_v36, %s1314_s23 }
 0x103   :  { %550 = vrot.lane.b32.xlu1 %v427_v40, %s1314_s23 }
 0x107   :  { %602 = vrot.lane.b32.xlu1 %v1431_v13, %s1315_s24 }
 0x10b   :  { %604 = vrot.lane.b32.xlu1 %v310_v30, %s1315_s24 }
 0x10f   :  { %712 = vperm.xlu1 %1265, %v1417_v9  }
 0x113   :  { %697 = vrot.lane.b32.xlu1 %v423_v36, %s1313_s22 }
 0x114   :  { %1266 = vset.pattern.permute.xlu1 %v1316_v46 }
 0x117   :  { %283 = vperm.xlu1 %1266, %v1417_v9   ;;  %v241_v9 = vld [vmem:[%s1869_s4] sm:$0xff] }
 0x11b   :  { %350 = vrot.lane.b32.xlu1 %v332_v45, %s1313_s22 }
 0x11c   :  { %1268 = vset.pattern.permute.xlu1 %v1302_v7 }
 0x154   :  { %v136_v47 = vpop.xlane.xlu0 %135 }
 0x156   :  { %v142_v48 = vpop.xlane.xlu1 %141 }
 0x158   :  { %v223_v49 = vpop.xlane.xlu0 %222 }
 0x159   :  { %v224_v50 = vadd.f32 %v223_v49, %v136_v47 }
 0x15a   :  { %v229_v51 = vpop.xlane.xlu1 %228 }
 0x15b   :  { %v232_v52 = vmul.f32 0.001953125, %v224_v50  ;;  %v230_v53 = vadd.f32 %v229_v51, %v142_v48 }
 0x15d   :  { %v234_v54 = vmul.f32 %v232_v52, %v232_v52  ;;  %v233_v55 = vmul.f32 0.001953125, %v230_v53 }
 0x15e   :  { %v1488_v56 = vpop.permute.xlu1 %315 }
 0x15f   :  { %v235_v57 = vsub.f32 %v233_v55, %v234_v54 }
 0x160   :  { %v1507_v7 = vpop.permute.xlu0 %502 }
 0x161   :  { %v236_v58 = vmax.f32 %v235_v57, 0.0 }
 0x162   :  { %v1490_v59 = vpop.permute.xlu1 %370 }
 0x163   :  { %v238_v60 = vadd.f32 1e-05, %v236_v58  ;;  %v373_v61 = vmul.f32 0.0, %v1490_v59 }
 0x165   :  { %1271 = vrsqrt.f32 %v238_v60  ;;  %385 = vrot.lane.b32.xlu0 %v373_v61, %s1317_s25  ;;  %391 = vrot.lane.b32.xlu1 %v373_v61, %s1317_s25  ;;  %v1516_v15 = vpop.permute.xlu0 %563 }
 0x166   :  { %v1495_v62 = vpop.permute.xlu1 %446 }
 0x16a   :  { %v1497_v63 = vpop.permute.xlu1 %430  ;;  %v1526_v23 = vpop.permute.xlu0 %617 }
 0x16b   :  { %v439_v3 = vmul.f32 0.0, %v1497_v63 }
 0x16d   :  { %v449_v10 = vmul.f32 %v1495_v62, %v439_v3 }
 0x16e   :  { %v1499_v0 = vpop.permute.xlu1 %432 }
 0x16f   :  { %v658_v27 = vpop.permute.xlu0 %657 }
 0x170   :  { %v662_v33 = vmul.f32 0.0, %v658_v27 }
 0x172   :  { %v1272_v5 = vpop.eup %1271  ;;  %v1505_v6 = vpop.permute.xlu1 %486 }
 0x173   :  { %v240_v8 = vmul.f32 %v1272_v5, %v237_v2  ;;  %v495_v11 = vmul.f32 0.0, %v1505_v6  ;;  %v1539_v31 = vpop.permute.xlu0 %699  ;;  %v318_v2 = vsel %vm317_vm2, %v1466_v42, %v1488_v56 }
 0x174   :  { %v707_v32 = vmul.f32 0.0, %v1539_v31 }
 0x175   :  { %250 = vperm.xlu0 %1267, %v240_v8   ;;  %v242_v12 = vmul.f32 %v240_v8, %v232_v52  ;;  %v505_v20 = vmul.f32 %v1507_v7, %v495_v11 }
 0x176   :  { %v1514_v13 = vpop.permute.xlu1 %488 }
 0x177   :  { %v243_v14 = vsub.f32 %v241_v9, %v242_v12  ;;  %v1557_v39 = vpop.permute.xlu0 %344  ;;  %v435_v12 = vsel %vm434_vm3, %v1497_v63, %v1499_v0 }
 0x179   :  { %257 = vperm.xlu1 %1268, %v243_v14   ;;  %461 = vrot.lane.b32.xlu0 %v449_v10, %s1315_s24 }
 0x17a   :  { %v1520_v21 = vpop.permute.xlu1 %548 }
 0x17d   :  { %467 = vrot.lane.b32.xlu1 %v449_v10, %s1315_s24  ;;  %517 = vrot.lane.b32.xlu0 %v505_v20, %s1314_s23 }
 0x17e   :  { %v1524_v22 = vpop.permute.xlu1 %550 }
 0x17f   :  { %v558_v24 = vmul.f32 0.0, %v1524_v22 }
 0x181   :  { %523 = vrot.lane.b32.xlu1 %v505_v20, %s1314_s23  ;;  %v568_v25 = vmul.f32 %v1516_v15, %v558_v24 }
 0x182   :  { %v1531_v26 = vpop.permute.xlu1 %602 }
 0x183   :  { %582 = vrot.lane.b32.xlu0 %v568_v25, %s1312_s5 }
 0x185   :  { %588 = vrot.lane.b32.xlu1 %v568_v25, %s1312_s5 }
 0x186   :  { %v1535_v28 = vpop.permute.xlu1 %604 }
 0x187   :  { %v612_v29 = vmul.f32 0.0, %v1535_v28 }
 0x189   :  { %v622_v30 = vmul.f32 %v1526_v23, %v612_v29 }
 0x18a   :  { %v1544_v34 = vpop.permute.xlu1 %712 }
 0x18b   :  { %642 = vrot.lane.b32.xlu1 %v622_v30, %s1309_s2  ;;  %636 = vrot.lane.b32.xlu0 %v622_v30, %s1309_s2  ;;  %v1547_v35 = vmul.f32 %v1544_v34, %v707_v32 }
 0x18e   :  { %v1553_v36 = vpop.permute.xlu1 %697 }
 0x18f   :  { %676 = vrot.lane.b32.xlu0 %v662_v33, %s1318_s3  ;;  %682 = vrot.lane.b32.xlu1 %v662_v33, %s1318_s3 }
 0x192   :  { %v1555_v37 = vpop.permute.xlu1 %283 }
 0x193   :  { %731 = vrot.lane.b32.xlu0 %v1547_v35, %s1303_s1 }
 0x196   :  { %v1559_v40 = vpop.permute.xlu1 %350 }
 0x1d7   :  { %v1561_v41 = vpop.permute.xlu0 %385  ;;  %v1563_v43 = vpop.permute.xlu1 %391 }
 0x1f0   :  { %v251_v44 = vpop.permute.xlu0 %250 }
 0x1f1   :  { %v253_v45 = vmul.f32 %v251_v44, %v1437_v16  ;;  %v254_v46 = vmul.f32 %v251_v44, %v1441_v18  ;;  %v266_v47 = vmul.f32 %v251_v44, %v1439_v17  ;;  %v267_v48 = vmul.f32 %v251_v44, %v1443_v19 }
 0x1f4   :  { %v258_v49 = vpop.permute.xlu1 %257 }
 0x1f5   :  { %v260_v50 = vadd.f32 %v258_v49, %v253_v45  ;;  %v261_v51 = vadd.f32 %v258_v49, %v254_v46  ;;  %v268_v52 = vadd.f32 %v266_v47, %v258_v49  ;;  %v269_v53 = vadd.f32 %v267_v48, %v258_v49 }
 0x1f7   :  { %v1569_v54 = vmax.f32 %v260_v50, 0.0  ;;  %v1571_v55 = vmax.f32 %v261_v51, 0.0  ;;  %v1573_v57 = vmax.f32 %v268_v52, 0.0  ;;  %v1575_v58 = vmax.f32 %v269_v53, 0.0 }
 0x1f9   :  { %v375_v16 = vmul.f32 %v1490_v59, %v1571_v55  ;;  %v374_v17 = vmul.f32 %v1490_v59, %v1569_v54  ;;  %v377_v18 = vmul.f32 %v1490_v59, %v1573_v57  ;;  %v378_v19 = vmul.f32 %v1490_v59, %v1575_v58 }
 0x1fa   :  { %v660_v60 = vmul.f32 %v658_v27, %v1569_v54  ;;  %v661_v61 = vmul.f32 %v658_v27, %v1571_v55  ;;  %v664_v3 = vmul.f32 %v658_v27, %v1575_v58  ;;  %v663_v59 = vmul.f32 %v658_v27, %v1573_v57 }
 0x1fb   :  { %389 = vrot.lane.b32.xlu0 %v375_v16, %s1317_s25  ;;  %387 = vrot.lane.b32.xlu1 %v374_v17, %s1317_s25  ;;  %v324_v5 = vmul.f32 %v1488_v56, %v1571_v55  ;;  %v323_v8 = vmul.f32 %v318_v2, %v1569_v54  ;;  %v326_v42 = vmul.f32 %v318_v2, %v1573_v57 }
 0x1fc   :  { %v327_v11 = vmul.f32 %v1488_v56, %v1575_v58  ;;  %v441_v24 = vmul.f32 %v1499_v0, %v1571_v55  ;;  %v440_v25 = vmul.f32 %v435_v12, %v1569_v54  ;;  %v443_v63 = vmul.f32 %v435_v12, %v1573_v57 }
 0x1fd   :  { %v334_v9 = vmul.f32 %v1462_v38, %v324_v5  ;;  %v333_v10 = vmul.f32 %v1462_v38, %v323_v8  ;;  %v336_v14 = vmul.f32 %v1462_v38, %v326_v42  ;;  %v444_v29 = vmul.f32 %v1499_v0, %v1575_v58 }
 0x1fe   :  { %v337_v20 = vmul.f32 %v1462_v38, %v327_v11  ;;  %v451_v56 = vmul.f32 %v1495_v62, %v441_v24  ;;  %v450_v27 = vmul.f32 %v1495_v62, %v440_v25  ;;  %v491_v38 = vsel %vm490_vm4, %v1505_v6, %v1514_v13  ;;  %v1701_v11 = vpop.permute.xlu1 %467 }
 0x1ff   :  { %393 = vrot.lane.b32.xlu0 %v377_v18, %s1317_s25  ;;  %395 = vrot.lane.b32.xlu1 %v378_v19, %s1317_s25  ;;  %v453_v30 = vmul.f32 %v1495_v62, %v443_v63  ;;  %v454_v32 = vmul.f32 %v1495_v62, %v444_v29  ;;  %v497_v33 = vmul.f32 %v1514_v13, %v1571_v55 }
 0x200   :  { %v496_v44 = vmul.f32 %v491_v38, %v1569_v54  ;;  %v499_v6 = vmul.f32 %v491_v38, %v1573_v57  ;;  %v500_v46 = vmul.f32 %v1514_v13, %v1575_v58  ;;  %v552_v62 = vsel %vm529_vm5, %v1520_v21, %v1524_v22 }
 0x201   :  { %v507_v0 = vmul.f32 %v1507_v7, %v497_v33  ;;  %v556_v49 = vmul.f32 %v1520_v21, %v1569_v54  ;;  %v557_v50 = vmul.f32 %v552_v62, %v1571_v55  ;;  %v560_v22 = vmul.f32 %v552_v62, %v1575_v58 }
 0x202   :  { %v506_v45 = vmul.f32 %v1507_v7, %v496_v44  ;;  %v509_v47 = vmul.f32 %v1507_v7, %v499_v6  ;;  %v510_v48 = vmul.f32 %v1507_v7, %v500_v46  ;;  %v559_v52 = vmul.f32 %v1520_v21, %v1573_v57  ;;  %v1703_v12 = vpop.permute.xlu1 %523 }
 0x203   :  { %672 = vrot.lane.b32.xlu0 %v660_v60, %s1318_s3  ;;  %674 = vrot.lane.b32.xlu1 %v661_v61, %s1318_s3  ;;  %v566_v13 = vmul.f32 %v1516_v15, %v556_v49  ;;  %v567_v51 = vmul.f32 %v1516_v15, %v557_v50  ;;  %v606_v7 = vsel %vm473_vm6, %v1531_v26, %v1535_v28 }
 0x204   :  { %v570_v53 = vmul.f32 %v1516_v15, %v560_v22  ;;  %v569_v16 = vmul.f32 %v1516_v15, %v559_v52  ;;  %v610_v17 = vmul.f32 %v1531_v26, %v1569_v54  ;;  %v611_v18 = vmul.f32 %v606_v7, %v1571_v55 }
 0x205   :  { %v614_v28 = vmul.f32 %v606_v7, %v1575_v58  ;;  %v613_v60 = vmul.f32 %v1531_v26, %v1573_v57  ;;  %v701_v15 = vsel %vm356_vm7, %v1553_v36, %v1539_v31  ;;  %v708_v31 = vmul.f32 %v1553_v36, %v1573_v57 }
 0x206   :  { %v620_v21 = vmul.f32 %v1526_v23, %v610_v17  ;;  %v621_v19 = vmul.f32 %v1526_v23, %v611_v18  ;;  %v709_v8 = vmul.f32 %v701_v15, %v1575_v58  ;;  %v287_v50 = vmul.f32 %v1555_v37, %v1571_v55 }
 0x207   :  { %680 = vrot.lane.b32.xlu0 %v664_v3, %s1318_s3  ;;  %678 = vrot.lane.b32.xlu1 %v663_v59, %s1318_s3  ;;  %v624_v61 = vmul.f32 %v1526_v23, %v614_v28  ;;  %v623_v2 = vmul.f32 %v1526_v23, %v613_v60  ;;  %v705_v3 = vmul.f32 %v1553_v36, %v1569_v54 }
 0x208   :  { %v706_v59 = vmul.f32 %v701_v15, %v1571_v55  ;;  %v719_v23 = vmul.f32 %v1544_v34, %v709_v8  ;;  %v289_v15 = vmul.f32 %v1555_v37, %v1575_v58 }
 0x209   :  { %v715_v26 = vmul.f32 %v1544_v34, %v705_v3 }
 0x20a   :  { %v716_v5 = vmul.f32 %v1544_v34, %v706_v59 }
 0x20b   :  { %348 = vrot.lane.b32.xlu0 %v334_v9, %s1313_s22  ;;  %346 = vrot.lane.b32.xlu1 %v333_v10, %s1313_s22  ;;  %v718_v9 = vmul.f32 %v1544_v34, %v708_v31  ;;  %v462_v10 = vpop.permute.xlu0 %461  ;;  %v288_v31 = vmul.f32 %v1555_v37, %v1573_v57 }
 0x20f   :  { %352 = vrot.lane.b32.xlu0 %v336_v14, %s1313_s22  ;;  %354 = vrot.lane.b32.xlu1 %v337_v20, %s1313_s22  ;;  %v518_v42 = vpop.permute.xlu0 %517  ;;  %v1707_v20 = vpop.permute.xlu1 %588 }
 0x213   :  { %465 = vrot.lane.b32.xlu0 %v451_v56, %s1315_s24  ;;  %463 = vrot.lane.b32.xlu1 %v450_v27, %s1315_s24  ;;  %v583_v36 = vpop.permute.xlu0 %582  ;;  %v1711_v34 = vpop.permute.xlu1 %642 }
 0x217   :  { %469 = vrot.lane.b32.xlu0 %v453_v30, %s1315_s24  ;;  %471 = vrot.lane.b32.xlu1 %v454_v32, %s1315_s24  ;;  %v1705_v14 = vpop.permute.xlu0 %636  ;;  %v1715_v56 = vpop.permute.xlu1 %682 }
 0x21b   :  { %521 = vrot.lane.b32.xlu0 %v507_v0, %s1314_s23  ;;  %519 = vrot.lane.b32.xlu1 %v506_v45, %s1314_s23  ;;  %v1709_v24 = vpop.permute.xlu0 %676 }
 0x21f   :  { %525 = vrot.lane.b32.xlu0 %v509_v47, %s1314_s23  ;;  %527 = vrot.lane.b32.xlu1 %v510_v48, %s1314_s23  ;;  %v1713_v25 = vpop.permute.xlu0 %731 }
 0x223   :  { %578 = vrot.lane.b32.xlu0 %v566_v13, %s1312_s5  ;;  %580 = vrot.lane.b32.xlu1 %v567_v51, %s1312_s5 }
 0x227   :  { %586 = vrot.lane.b32.xlu0 %v570_v53, %s1312_s5  ;;  %584 = vrot.lane.b32.xlu1 %v569_v16, %s1312_s5 }
 0x22b   :  { %632 = vrot.lane.b32.xlu0 %v620_v21, %s1309_s2  ;;  %634 = vrot.lane.b32.xlu1 %v621_v19, %s1309_s2  ;;  %v286_v19 = vmul.f32 %v1555_v37, %v1569_v54 }
 0x22f   :  { %640 = vrot.lane.b32.xlu0 %v624_v61, %s1309_s2  ;;  %638 = vrot.lane.b32.xlu1 %v623_v2, %s1309_s2 }
 0x233   :  { %727 = vrot.lane.b32.xlu0 %v715_v26, %s1303_s1  ;;  %729 = vrot.lane.b32.xlu1 %v716_v5, %s1303_s1 }
 0x237   :  { %735 = vrot.lane.b32.xlu0 %v719_v23, %s1303_s1  ;;  %733 = vrot.lane.b32.xlu1 %v718_v9, %s1303_s1 }
 0x23b   :  { %737 = vrot.lane.b32.xlu1 %v1547_v35, %s1303_s1 }
 0x26d   :  { %v388_v35 = vpop.permute.xlu1 %387  ;;  %v390_v27 = vpop.permute.xlu0 %389 }
 0x26e   :  { %v399_v52 = vsel %vm397_vm8, %v388_v35, %v390_v27 }
 0x271   :  { %v396_v63 = vpop.permute.xlu1 %395  ;;  %v394_v29 = vpop.permute.xlu0 %393 }
 0x272   :  { %v401_v27 = vsel %vm397_vm8, %v394_v29, %v396_v63 }
 0x275   :  { %v1717_v38 = vpop.permute.xlu1 %674  ;;  %v1719_v30 = vpop.permute.xlu0 %672 }
 0x279   :  { %v1721_v32 = vpop.permute.xlu1 %678  ;;  %v1723_v33 = vpop.permute.xlu0 %680 }
 0x27d   :  { %v347_v44 = vpop.permute.xlu1 %346  ;;  %v349_v0 = vpop.permute.xlu0 %348 }
 0x27e   :  { %v358_v49 = vsel %vm356_vm7, %v347_v44, %v349_v0  ;;  %v357_v18 = vsel %vm356_vm7, %v1557_v39, %v347_v44  ;;  %v398_v39 = vsel %vm397_vm8, %v1561_v41, %v388_v35 }
 0x27f   :  { %v366_v13 = vadd.f32 %v358_v49, %v287_v50  ;;  %v365_v60 = vadd.f32 %v357_v18, %v286_v19 }
 0x281   :  { %v355_v45 = vpop.permute.xlu1 %354  ;;  %v353_v6 = vpop.permute.xlu0 %352  ;;  %v407_v53 = vadd.f32 %v399_v52, %v366_v13  ;;  %v406_v23 = vadd.f32 %v398_v39, %v365_v60 }
 0x282   :  { %v360_v28 = vsel %vm356_vm7, %v353_v6, %v355_v45  ;;  %v359_v54 = vsel %vm356_vm7, %v1559_v40, %v353_v6 }
 0x283   :  { %v368_v26 = vadd.f32 %v360_v28, %v289_v15  ;;  %v367_v0 = vadd.f32 %v359_v54, %v288_v31 }
 0x285   :  { %v464_v46 = vpop.permute.xlu1 %463  ;;  %v466_v62 = vpop.permute.xlu0 %465  ;;  %v409_v41 = vadd.f32 %v401_v27, %v368_v26 }
 0x286   :  { %v475_v7 = vsel %vm473_vm6, %v464_v46, %v466_v62  ;;  %v474_v8 = vsel %vm473_vm6, %v462_v10, %v464_v46  ;;  %v400_v10 = vsel %vm397_vm8, %v1563_v43, %v394_v29 }
 0x287   :  { %v483_v55 = vadd.f32 %v475_v7, %v407_v53  ;;  %v482_v45 = vadd.f32 %v474_v8, %v406_v23  ;;  %v408_v49 = vadd.f32 %v400_v10, %v367_v0 }
 0x289   :  { %v472_v47 = vpop.permute.xlu1 %471  ;;  %v470_v48 = vpop.permute.xlu0 %469 }
 0x28a   :  { %v476_v63 = vsel %vm473_vm6, %v1701_v11, %v470_v48 }
 0x28b   :  { %v484_v29 = vadd.f32 %v476_v63, %v408_v49 }
 0x28d   :  { %v520_v51 = vpop.permute.xlu1 %519  ;;  %v522_v22 = vpop.permute.xlu0 %521 }
 0x28e   :  { %v531_v21 = vsel %vm529_vm5, %v520_v51, %v522_v22  ;;  %v530_v44 = vsel %vm529_vm5, %v518_v42, %v520_v51 }
 0x28f   :  { %v539_v61 = vadd.f32 %v531_v21, %v483_v55  ;;  %v538_v57 = vadd.f32 %v530_v44, %v482_v45 }
 0x291   :  { %v528_v16 = vpop.permute.xlu1 %527  ;;  %v526_v17 = vpop.permute.xlu0 %525 }
 0x292   :  { %v533_v35 = vsel %vm529_vm5, %v526_v17, %v528_v16  ;;  %v532_v43 = vsel %vm529_vm5, %v1703_v12, %v526_v17  ;;  %v686_v16 = vsel %vm684_vm9, %v1717_v38, %v1709_v24  ;;  %v685_v12 = vsel %vm684_vm9, %v1719_v30, %v1717_v38 }
 0x293   :  { %v540_v7 = vadd.f32 %v532_v43, %v484_v29  ;;  %v688_v17 = vsel %vm684_vm9, %v1723_v33, %v1715_v56 }
 0x295   :  { %v581_v2 = vpop.permute.xlu1 %580  ;;  %v579_v3 = vpop.permute.xlu0 %578 }
 0x296   :  { %v591_v59 = vsel %vm490_vm4, %v581_v2, %v583_v36  ;;  %v477_v36 = vsel %vm473_vm6, %v470_v48, %v472_v47  ;;  %v590_v40 = vsel %vm490_vm4, %v579_v3, %v581_v2 }
 0x297   :  { %v599_v5 = vadd.f32 %v591_v59, %v539_v61  ;;  %v485_v37 = vadd.f32 %v477_v36, %v409_v41  ;;  %v598_v13 = vadd.f32 %v590_v40, %v538_v57 }
 0x299   :  { %v585_v58 = vpop.permute.xlu1 %584  ;;  %v587_v9 = vpop.permute.xlu0 %586  ;;  %v541_v50 = vadd.f32 %v533_v35, %v485_v37 }
 0x29a   :  { %v593_v42 = vsel %vm490_vm4, %v587_v9, %v1707_v20  ;;  %v592_v20 = vsel %vm490_vm4, %v585_v58, %v587_v9 }
 0x29b   :  { %v601_v22 = vadd.f32 %v593_v42, %v541_v50  ;;  %v600_v21 = vadd.f32 %v592_v20, %v540_v7 }
 0x29d   :  { %v635_v6 = vpop.permute.xlu1 %634  ;;  %v633_v46 = vpop.permute.xlu0 %632 }
 0x29e   :  { %v645_v62 = vsel %vm434_vm3, %v635_v6, %v1705_v14  ;;  %v644_v47 = vsel %vm434_vm3, %v633_v46, %v635_v6 }
 0x29f   :  { %v653_v51 = vadd.f32 %v645_v62, %v599_v5  ;;  %v652_v52 = vadd.f32 %v644_v47, %v598_v13  ;;  %v687_v5 = vsel %vm684_vm9, %v1721_v32, %v1723_v33  ;;  %v784_v32 = vld [vmem:[%s1876_s11] sm:$0xff] }
 0x2a0   :  { %1233 = vmatmul.mubr.msk.f32.vlgmr.msra.gmra.mxu1 %vm54_vm1, %v784_v32  ;;  %v780_v47 = vld [vmem:[%s1872_s7] sm:$0xff] }
 0x2a1   :  { %v639_v11 = vpop.permute.xlu1 %638  ;;  %v641_v48 = vpop.permute.xlu0 %640  ;;  %v694_v55 = vadd.f32 %v686_v16, %v653_v51  ;;  %1236 = vmatpush1.msk.msra.mxu1 %vm58_vm0, %v1402_v1  ;;  %1121 = vmatprep.mubr.f32.mxu1 %v1301_v4  ;;  %v776_v1 = vld [vmem:[%s1871_s6] sm:$0xff] }
 0x2a2   :  { %v647_v14 = vsel %vm434_vm3, %v641_v48, %v1711_v34  ;;  %v646_v18 = vsel %vm434_vm3, %v639_v11, %v641_v48  ;;  %v693_v34 = vadd.f32 %v685_v12, %v652_v52 }
 0x2a3   :  { %v655_v53 = vadd.f32 %v647_v14, %v601_v22  ;;  %v654_v61 = vadd.f32 %v646_v18, %v600_v21 }
 0x2a4   :  { %1237 = vmatmul.mubr.msk.f32.vlgmr.msra.gmra.mxu1 %vm54_vm1, %v784_v32 }
 0x2a5   :  { %v730_v19 = vpop.permute.xlu1 %729  ;;  %v728_v28 = vpop.permute.xlu0 %727  ;;  %v696_v60 = vadd.f32 %v688_v17, %v655_v53  ;;  %v695_v39 = vadd.f32 %v687_v5, %v654_v61 }
 0x2a6   :  { %v740_v15 = vsel %vm317_vm2, %v730_v19, %v1713_v25  ;;  %v739_v24 = vsel %vm317_vm2, %v728_v28, %v730_v19 }
 0x2a7   :  { %v1778_v2 = vadd.f32 %v740_v15, %v694_v55  ;;  %v747_v38 = vadd.f32 %v739_v24, %v693_v34 }
 0x2a9   :  { %v734_v30 = vpop.permute.xlu1 %733  ;;  %v736_v3 = vpop.permute.xlu0 %735  ;;  %v751_v56 = vadd.f32 %v1778_v2, %v747_v38  ;;  %v755_v59 = vmul.f32 %v747_v38, %v747_v38  ;;  %v756_v26 = vmul.f32 %v1778_v2, %v1778_v2 }
 0x2aa   :  { %v741_v25 = vsel %vm317_vm2, %v734_v30, %v736_v3 }
 0x2ab   :  { %752 = vadd.xlane.f32.xlu0 %v751_v56  ;;  %v749_v54 = vadd.f32 %v741_v25, %v695_v39  ;;  %v757_v31 = vadd.f32 %v756_v26, %v755_v59 }
 0x2ad   :  { %v738_v8 = vpop.permute.xlu1 %737  ;;  %v765_v27 = vmul.f32 %v749_v54, %v749_v54 }
 0x2ae   :  { %v742_v23 = vsel %vm317_vm2, %v736_v3, %v738_v8 }
 0x2af   :  { %v750_v58 = vadd.f32 %v742_v23, %v696_v60  ;;  %758 = vadd.xlane.f32.xlu0 %v757_v31  ;;  %v783_v60 = vld [vmem:[%s1873_s8] sm:$0xff] }
 0x2b1   :  { %v761_v9 = vadd.f32 %v750_v58, %v749_v54  ;;  %v766_v36 = vmul.f32 %v750_v58, %v750_v58 }
 0x2b3   :  { %762 = vadd.xlane.f32.xlu1 %v761_v9  ;;  %v767_v44 = vadd.f32 %v766_v36, %v765_v27 }
 0x2b5   :  { %768 = vadd.xlane.f32.xlu0 %v767_v44 }
 0x334   :  { %v753_v33 = vpop.xlane.xlu0 %752 }
 0x338   :  { %v759_v0 = vpop.xlane.xlu0 %758 }
 0x33c   :  { %v763_v45 = vpop.xlane.xlu1 %762 }
 0x33d   :  { %v764_v41 = vadd.f32 %v763_v45, %v753_v33 }
 0x33e   :  { %v769_v35 = vpop.xlane.xlu0 %768 }
 0x33f   :  { %v771_v40 = vmul.f32 0.001953125, %v764_v41  ;;  %v770_v10 = vadd.f32 %v769_v35, %v759_v0 }
 0x341   :  { %v773_v37 = vmul.f32 %v771_v40, %v771_v40  ;;  %v772_v57 = vmul.f32 0.001953125, %v770_v10 }
 0x343   :  { %v774_v6 = vsub.f32 %v772_v57, %v773_v37 }
 0x345   :  { %v775_v46 = vmax.f32 %v774_v6, 0.0 }
 0x347   :  { %v777_v63 = vadd.f32 1e-05, %v775_v46 }
 0x349   :  { %1273 = vrsqrt.f32 %v777_v63 }
 0x356   :  { %v1274_v42 = vpop.eup %1273 }
 0x357   :  { %v779_v62 = vmul.f32 %v1274_v42, %v776_v1 }
 0x359   :  { %787 = vperm.xlu1 %1268, %v779_v62   ;;  %v781_v49 = vmul.f32 %v779_v62, %v771_v40 }
 0x35b   :  { %v782_v50 = vsub.f32 %v780_v47, %v781_v49 }
 0x35d   :  { %794 = vperm.xlu0 %1267, %v782_v50   ;;  %v1143_v50 = vld [vmem:[%s1874_s9] sm:$0xff]  ;;  %s1319_s9 = smov [#allocation3]  }
 0x360   :  { %v1802_v13 = vpop.f32.mrf.mxu1 }
 0x361   :  { %v964_v22 = vmul.f32 %v1802_v13, %v1802_v13 }
 0x362   :  { %v1804_v51 = vpop.f32.mrf.mxu1 }
 0x363   :  { %v960_v43 = vadd.f32 %v1804_v51, %v1802_v13  ;;  %v965_v52 = vmul.f32 %v1804_v51, %v1804_v51 }
 0x364   :  { %v1808_v29 = vpop.f32.mrf.mxu1 }
 0x365   :  { %v966_v20 = vadd.f32 %v965_v52, %v964_v22  ;;  %v1132_v39 = vmul.f32 %v1808_v29, %v1808_v29  ;;  %v1155_v52 = vld [vmem:[%s1877_s12] sm:$0xff] }
 0x366   :  { %v1814_v11 = vpop.f32.mrf.mxu1 }
 0x367   :  { %v1128_v48 = vadd.f32 %v1814_v11, %v1808_v29 }
 0x37c   :  { %961 = vadd.xlane.f32.xlu0 %v960_v43 }
 0x37d   :  { %1129 = vadd.xlane.f32.xlu1 %v1128_v48 }
 0x381   :  { %967 = vadd.xlane.f32.xlu1 %v966_v20 }
 0x3d4   :  { %v788_v14 = vpop.permute.xlu1 %787 }
 0x3d5   :  { %v790_v7 = vmul.f32 %v788_v14, %v747_v38  ;;  %v791_v53 = vmul.f32 %v788_v14, %v1778_v2  ;;  %v971_v16 = vmul.f32 %v788_v14, %v750_v58  ;;  %v970_v12 = vmul.f32 %v788_v14, %v749_v54 }
 0x3d6   :  { %v1133_v54 = vmul.f32 %v1814_v11, %v1814_v11 }
 0x3d8   :  { %v795_v17 = vpop.permute.xlu0 %794  ;;  %v1134_v31 = vadd.f32 %v1133_v54, %v1132_v39 }
 0x3d9   :  { %v797_v18 = vadd.f32 %v795_v17, %v790_v7  ;;  %v798_v21 = vadd.f32 %v795_v17, %v791_v53  ;;  %v973_v19 = vadd.f32 %v971_v16, %v795_v17  ;;  %v972_v55 = vadd.f32 %v970_v12, %v795_v17  ;;  %v1147_v7 = vld [vmem:[%s1875_s10] sm:$0xff]  ;;  %s1212_s10 = sshll.u32 %s1319_s9, 4  ;;  %s1213_s10 = int_to_ptr.vmem [resolvable:$true] %s1212_s10 }
 0x3da   :  { %v1159_v12 = vld [vmem:[%s1878_s13] sm:$0xff]  ;;  %s1279_s12 = scalar_lea.vmem %s1213_s10, 512  ;;  %p1284_p1 = scmp.lt.s32.totalorder %s1213_s10, %s1213_s10 }
 0x3db   :  { %v799_v34 = vmax.f32 %v797_v18, 0.0  ;;  %v800_v28 = vmax.f32 %v798_v21, 0.0  ;;  %v975_v15 = vmax.f32 %v973_v19, 0.0  ;;  %v974_v24 = vmax.f32 %v972_v55, 0.0  ;;  %p1280_p0 = scmp.ne.s32.totalorder %s1213_s10, %s1279_s12  ;;  %p1285_p2 = scmp.lt.s32.totalorder %s1279_s12, %s1279_s12 }
 0x3dd   :  { %835 = vmatprep.subr.mxu0 %v800_v28  ;;  %p1286_p3 = por %p1285_p2, %p1284_p1 }
 0x3de   :  { %836 = vmatpush1.msra.mxu0 %v799_v34 }
 0x3df   :  { %1230 = vmatmul.mubr.msk.f32.vlgmr.msra.gmra.mxu0 %vm801_vm10, %v783_v60  ;;  %1006 = vmatprep.subr.mxu0 %v975_v15  ;;  %p1287_p4 = pnand %p1286_p3, %p1280_p0 }
 0x3e0   :  { %1007 = vmatpush1.msra.mxu0 %v974_v24  ;;  %1040 = vmatprep.mubr.f32.mxu0 %v1301_v4 }
 0x3e3   :  { %1234 = vmatmul.mubr.msk.f32.vlgmr.msra.gmra.mxu0 %vm801_vm10, %v783_v60 }
 0x405   :  { %v962_v36 = vpop.xlane.xlu0 %961 }
 0x406   :  { %v1130_v23 = vpop.xlane.xlu1 %1129 }
 0x407   :  { %v1131_v33 = vadd.f32 %v1130_v23, %v962_v36 }
 0x409   :  { %v1150_v35 = vmul.f32 0.001953125, %v1131_v33 }
 0x40a   :  { %v968_v58 = vpop.xlane.xlu1 %967 }
 0x40b   :  { %v1152_v46 = vmul.f32 %v1150_v35, %v1150_v35 }
 0x49f   :  { %v1823_v61 = vpop.f32.mrf.mxu0 }
 0x4a0   :  { %v880_v56 = vmul.f32 %v1823_v61, %v1823_v61 }
 0x4a1   :  { %v1825_v2 = vpop.f32.mrf.mxu0 }
 0x4a2   :  { %v876_v38 = vadd.f32 %v1825_v2, %v1823_v61  ;;  %v881_v30 = vmul.f32 %v1825_v2, %v1825_v2 }
 0x4a3   :  { %v1831_v3 = vpop.f32.mrf.mxu0 }
 0x4a4   :  { %877 = vadd.xlane.f32.xlu1 %v876_v38  ;;  %v882_v59 = vadd.f32 %v881_v30, %v880_v56  ;;  %v1051_v4 = vmul.f32 %v1831_v3, %v1831_v3 }
 0x4a5   :  { %v1044_v26 = vpop.f32.mrf.mxu0 }
 0x4a6   :  { %v1047_v5 = vadd.f32 %v1044_v26, %v1831_v3  ;;  %v1052_v25 = vmul.f32 %v1044_v26, %v1044_v26 }
 0x4a8   :  { %883 = vadd.xlane.f32.xlu1 %v882_v59  ;;  %v1053_v8 = vadd.f32 %v1052_v25, %v1051_v4 }
 0x4ac   :  { %1048 = vadd.xlane.f32.xlu1 %v1047_v5 }
 0x4b0   :  { %1054 = vadd.xlane.f32.xlu1 %v1053_v8 }
 0x4b4   :  { %1135 = vadd.xlane.f32.xlu1 %v1134_v31 }
 0x52d   :  { %v878_v9 = vpop.xlane.xlu1 %877 }
 0x531   :  { %v884_v27 = vpop.xlane.xlu1 %883 }
 0x535   :  { %v1049_v44 = vpop.xlane.xlu1 %1048 }
 0x536   :  { %v1050_v32 = vadd.f32 %v1049_v44, %v878_v9 }
 0x538   :  { %v1138_v0 = vmul.f32 0.001953125, %v1050_v32 }
 0x539   :  { %v1055_v45 = vpop.xlane.xlu1 %1054 }
 0x53a   :  { %v1056_v41 = vadd.f32 %v1055_v45, %v884_v27  ;;  %v1140_v40 = vmul.f32 %v1138_v0, %v1138_v0 }
 0x53c   :  { %v1139_v10 = vmul.f32 0.001953125, %v1056_v41 }
 0x53d   :  { %v1136_v37 = vpop.xlane.xlu1 %1135 }
 0x53e   :  { %v1141_v57 = vsub.f32 %v1139_v10, %v1140_v40  ;;  %v1137_v6 = vadd.f32 %v1136_v37, %v968_v58 }
 0x540   :  { %v1142_v63 = vmax.f32 %v1141_v57, 0.0  ;;  %v1151_v1 = vmul.f32 0.001953125, %v1137_v6 }
 0x542   :  { %v1144_v42 = vadd.f32 1e-05, %v1142_v63  ;;  %v1153_v62 = vsub.f32 %v1151_v1, %v1152_v46 }
 0x544   :  { %1275 = vrsqrt.f32 %v1144_v42  ;;  %v1154_v47 = vmax.f32 %v1153_v62, 0.0 }
 0x546   :  { %v1156_v49 = vadd.f32 1e-05, %v1154_v47 }
 0x548   :  { %1277 = vrsqrt.f32 %v1156_v49 }
 0x551   :  { %v1276_v43 = vpop.eup %1275 }
 0x552   :  { %v1146_v22 = vmul.f32 %v1276_v43, %v1143_v50 }
 0x554   :  { %1164 = vperm.xlu0 %1267, %v1146_v22   ;;  %v1148_v20 = vmul.f32 %v1146_v22, %v1138_v0 }
 0x555   :  { %v1278_v48 = vpop.eup %1277 }
 0x556   :  { %v1158_v14 = vmul.f32 %v1278_v48, %v1155_v52  ;;  %v1149_v53 = vsub.f32 %v1147_v7, %v1148_v20 }
 0x558   :  { %1178 = vperm.xlu1 %1268, %v1158_v14   ;;  %v1160_v16 = vmul.f32 %v1158_v14, %v1150_v35 }
 0x55a   :  { %v1161_v17 = vsub.f32 %v1159_v12, %v1160_v16 }
 0x55c   :  { %1171 = vperm.xlu1 %1268, %v1149_v53  }
 0x560   :  { %1185 = vperm.xlu1 %1268, %v1161_v17  }
 0x5cf   :  { %v1165_v21 = vpop.permute.xlu0 %1164 }
 0x5d0   :  { %v1167_v55 = vmul.f32 %v1165_v21, %v1823_v61  ;;  %v1168_v34 = vmul.f32 %v1165_v21, %v1825_v2  ;;  %v1194_v28 = vmul.f32 %v1165_v21, %v1831_v3  ;;  %v1195_v60 = vmul.f32 %v1165_v21, %v1044_v26 }
 0x5d3   :  { %v1179_v18 = vpop.permute.xlu1 %1178 }
 0x5d4   :  { %v1181_v15 = vmul.f32 %v1179_v18, %v1802_v13  ;;  %v1182_v24 = vmul.f32 %v1179_v18, %v1804_v51  ;;  %v1198_v38 = vmul.f32 %v1179_v18, %v1808_v29  ;;  %v1199_v30 = vmul.f32 %v1179_v18, %v1814_v11 }
 0x5d7   :  { %v1172_v19 = vpop.permute.xlu1 %1171 }
 0x5d8   :  { %v1174_v56 = vadd.f32 %v1172_v19, %v1167_v55  ;;  %v1175_v59 = vadd.f32 %v1172_v19, %v1168_v34  ;;  %v1196_v4 = vadd.f32 %v1194_v28, %v1172_v19  ;;  %v1197_v5 = vadd.f32 %v1195_v60, %v1172_v19 }
 0x5db   :  { %v1186_v25 = vpop.permute.xlu1 %1185 }
 0x5dc   :  { %v1188_v61 = vadd.f32 %v1186_v25, %v1181_v15  ;;  %v1189_v2 = vadd.f32 %v1186_v25, %v1182_v24  ;;  %v1200_v39 = vadd.f32 %v1198_v38, %v1186_v25  ;;  %v1201_v3 = vadd.f32 %v1199_v30, %v1186_v25 }
 0x5de   :  { %v1190_v26 = vadd.f32 %v1188_v61, %v1174_v56  ;;  %v1191_v54 = vadd.f32 %v1189_v2, %v1175_v59  ;;  %v1202_v13 = vadd.f32 %v1200_v39, %v1196_v4  ;;  %v1203_v8 = vadd.f32 %v1201_v3, %v1197_v5 }
 0x5e0   :  { %1192 = vst [vmem:[#allocation3] sm:$0xff] %v1190_v26  ;;  %1193 = vst [vmem:[#allocation3 + $0x8] sm:$0xff] %v1191_v54 }
 0x5e1   :  { %1205 = vst [vmem:[#allocation3 + $0x10] sm:$0xff] %v1202_v13  ;;  %1206 = vst [vmem:[#allocation3 + $0x18] sm:$0xff] %v1203_v8 }
 0x5e2   :  { %1290 = shalt.err (!%p1287_p4)
}
 0x5e3   :  { %s1320_s13 = smov 256  }
 0x5e4   :  { %1218 = dma.vmem_to_hbm [thread:$0]  %s1213_s10, 512, %s1879_s14, [#allocation4], %s1320_s13, %s1320_s13, %s1317_s25  }
 0x5e5   :  { %1299 = dma.done.wait [#allocation4], 512  }
 0x5e6   :  { %1300 = vsyncadd [#allocation4], 4294966784 }
 0x5e7   :  { %1222 = vsyncpa [#allocation4], 1 }

</bundles_post_ra>
